<compile_context>
chip_gen: v7x
topology: tpu7x:2x2x1
jax: 0.10.0
libtpu: 0.0.40
codegen_flags: <defaults>
</compile_context>

<pallas_src>
import jax
import jax.numpy as jnp
from jax.experimental import pallas as pl
from jax.experimental.pallas import tpu as pltpu


_OUT_LANES = 128      # lane-dense packed output slab width
_COL_RATING = 0
_COL_ATT = 1
_COL_UIDX = 2
_COL_IIDX = 3
_COL_REG = 4

_MAX_TB = 256         # batch-tile cap; v6e/v5e can push toward 512-1024 after a
                      # VMEM/spill check, v7x should stay <= ~512 (64 MiB VMEM).


# ----------------------------------------------------------------------------
# Fused kernel: MLP rating + masked cross attention + per-row regularizer.
# ----------------------------------------------------------------------------
def _make_fused_kernel(num_layers):
    n_hidden = num_layers - 1

    def kernel(*refs):
        ue_ref, ie_ref, uc_ref, ic_ref, um_ref, im_ref = refs[:6]
        w0u_ref, w0i_ref, b0_ref = refs[6:9]
        hidden_refs = refs[9:9 + 2 * n_hidden]
        wpt_ref = refs[9 + 2 * n_hidden]      # (1, num_factors) f32
        bp_ref = refs[10 + 2 * n_hidden]      # (1, 1) f32
        out_ref = refs[11 + 2 * n_hidden]     # (TB, 128) f32

        ue = ue_ref[...]                      # (TB, E) f32
        ie = ie_ref[...]

        # --------------------------------------------------------------
        # MLP tower; the concat(ue, ie) is replaced by the split-weight form:
        #   h = ue @ W0[:E] + ie @ W0[E:] + b0.
        # TODO(synk): nn.Dropout(p=0.5 / p=0.4) uses eval-mode (identity)
        # semantics; train-mode dropout would need pltpu.prng_seed/random_bits.
        # --------------------------------------------------------------
        h = (jnp.dot(ue.astype(jnp.bfloat16), w0u_ref[...],
                     preferred_element_type=jnp.float32)
             + jnp.dot(ie.astype(jnp.bfloat16), w0i_ref[...],
                       preferred_element_type=jnp.float32)
             + b0_ref[...])
        h = jnp.maximum(h, 0.0)
        for layer in range(n_hidden):
            w = hidden_refs[2 * layer][...]        # (in, out) bf16
            b = hidden_refs[2 * layer + 1][...]    # (1, out)  f32
            h = jnp.dot(h.astype(jnp.bfloat16), w,
                        preferred_element_type=jnp.float32) + b
            h = jnp.maximum(h, 0.0)

        # predict (N=1): VPU broadcast-multiply + lane reduce instead of a
        # degenerate (TB, NF) x (NF, 1) MXU matmul.
        rating = jnp.sum(h * wpt_ref[...], axis=-1, keepdims=True) + bp_ref[...]

        # --------------------------------------------------------------
        # Cross attention stand-in: item embedding attends over user reviews
        # and vice versa; masked_predict = <attended_user, attended_item>.
        # q=1 contractions as VPU mul + lane reduce over a static review loop
        # (no degenerate MXU matmuls, no big (TB, L, E) temporaries).
        # --------------------------------------------------------------
        e_dim = ue.shape[-1]
        scale = jnp.float32(1.0 / (e_dim ** 0.5))
        neg = jnp.float32(-1e30)
        big = jnp.int32(2 ** 30)

        def attend(query, ctx_ref, mask):
            # query: (TB, E) f32; ctx_ref: VMEM ref (TB, L, E) f32;
            # mask: (TB, L) f32 with 1.0 == padded position.
            # TODO(synk): for very large L switch the static loop to a blocked
            # fori_loop formulation.
            n_rev = ctx_ref.shape[1]
            cols = [jnp.sum(query * ctx_ref[:, l, :], axis=-1, keepdims=True)
                    for l in range(n_rev)]
            s = jnp.concatenate(cols, axis=-1) * scale          # (TB, L)
            s = jnp.where(mask > 0.5, neg, s)
            m = jnp.max(s, axis=-1, keepdims=True)
            e = jnp.exp(s - m)
            p = e * pl.reciprocal(jnp.sum(e, axis=-1, keepdims=True),
                                  approx=True)                  # (TB, L)
            att = p[:, 0:1] * ctx_ref[:, 0, :]
            for l in range(1, n_rev):
                att = att + p[:, l:l + 1] * ctx_ref[:, l, :]    # (TB, E)
            ids = jax.lax.broadcasted_iota(jnp.int32, s.shape, 1)
            idx = jnp.min(jnp.where(s == m, ids, big),
                          axis=-1, keepdims=True)               # (TB, 1)
            return att, idx

        att_u, uidx = attend(ie, uc_ref, um_ref[...])   # item queries user reviews
        att_i, iidx = attend(ue, ic_ref, im_ref[...])   # user queries item reviews
        att_pred = jnp.sum(att_u * att_i, axis=-1, keepdims=True)   # (TB, 1)

        # Stand-in review_regularizer(interaction): per-row L2 of cat(ue, ie);
        # summed over the batch in the JAX wrapper (keeps the grid parallel).
        reg_row = (jnp.sum(ue * ue, axis=-1, keepdims=True)
                   + jnp.sum(ie * ie, axis=-1, keepdims=True))      # (TB, 1)

        # --------------------------------------------------------------
        # Pack all per-example scalars into one lane-dense (TB, 128) slab.
        # --------------------------------------------------------------
        col = jax.lax.broadcasted_iota(jnp.int32, out_ref.shape, 1)
        slab = jnp.where(col == _COL_RATING, rating, 0.0)
        slab = jnp.where(col == _COL_ATT, att_pred, slab)
        slab = jnp.where(col == _COL_UIDX, uidx.astype(jnp.float32), slab)
        slab = jnp.where(col == _COL_IIDX, iidx.astype(jnp.float32), slab)
        slab = jnp.where(col == _COL_REG, reg_row, slab)
        out_ref[...] = slab

    return kernel


# ----------------------------------------------------------------------------
# BlockSpec helpers.
# ----------------------------------------------------------------------------
def _batch_spec(shape, tb):
    """Tile along the batch (leading) dim; all other dims full."""
    ndim = len(shape)
    block = (tb,) + tuple(shape[1:])
    zeros = (0,) * (ndim - 1)
    return pl.BlockSpec(block, lambda b: (b,) + zeros)


def _resident_spec(shape):
    """Whole-array block with a constant index -> stays resident in VMEM."""
    # TODO(synk): at production weight sizes, pipeline_mode=pl.Buffered(1)
    # would drop the redundant double-buffer copy of these resident weights.
    zeros = (0,) * len(shape)
    return pl.BlockSpec(tuple(shape), lambda b: zeros)


def _pick_tile(batch):
    """Batch-tile rows. Big tiles amortize ~0.35us/step pipeline overhead; try
    to keep >=2 grid steps so ('parallel',) can shard across both v7x TCs."""
    if batch > _MAX_TB:
        return _MAX_TB
    if batch >= 32:
        return min(_MAX_TB, ((batch + 1) // 2 + 7) // 8 * 8)
    return batch


# ----------------------------------------------------------------------------
# RatingPredictor forward (glue: embedding gather, dtype/layout plumbing).
# ----------------------------------------------------------------------------
def rating_predictor_forward(params, user, item, user_context, item_context,
                             user_key_mask, item_key_mask, mode="Train"):
    B = user.shape[0]
    E = params["user_embed"].shape[1]
    num_layers = len(params["mlp"])

    # Embedding gather stays in XLA at these sizes.
    # TODO(synk): for production B move the gather in-kernel via
    # PrefetchScalarGridSpec scalar-prefetched index arrays.
    user_embed = jnp.take(params["user_embed"], user, axis=0)       # (B, E) f32
    item_embed = jnp.take(params["item_embed"], item, axis=0)       # (B, E) f32

    # Masks stay 2-D (B, L); the >0.5 "is padded" test happens in-kernel.
    um = user_key_mask.astype(jnp.float32)                          # (B, Lu)
    im = item_key_mask.astype(jnp.float32)                          # (B, Li)

    # Split the first MLP weight into user / item halves (replaces the concat).
    w0, b0 = params["mlp"][0]
    weight_inputs = [w0[:E].astype(jnp.bfloat16),
                     w0[E:].astype(jnp.bfloat16),
                     b0]
    for (w, b) in params["mlp"][1:]:
        weight_inputs += [w.astype(jnp.bfloat16), b]
    wp, bp = params["predict"]
    weight_inputs += [wp.T, bp]        # predict as a (1, NF) row for the VPU

    # Each per-example tensor enters the kernel exactly once, in f32.
    per_example = [user_embed, item_embed, user_context, item_context, um, im]

    tb = _pick_tile(B)
    grid = (pl.cdiv(B, tb),)

    in_specs = ([_batch_spec(a.shape, tb) for a in per_example]
                + [_resident_spec(a.shape) for a in weight_inputs])
    out_specs = _batch_spec((B, _OUT_LANES), tb)

    slab = pl.pallas_call(
        _make_fused_kernel(num_layers),
        grid=grid,
        in_specs=in_specs,
        out_specs=out_specs,
        out_shape=jax.ShapeDtypeStruct((B, _OUT_LANES), jnp.float32),
        compiler_params=pltpu.CompilerParams(
            dimension_semantics=("parallel",),
            vmem_limit_bytes=48 * 1024 * 1024),
    )(*per_example, *weight_inputs)

    preds = {
        "rating_pred": slab[:, _COL_RATING],          # (B,)
        "att": slab[:, _COL_ATT],                     # (B,)  (squeeze semantics)
    }
    user_review_idx = slab[:, _COL_UIDX].astype(jnp.int32)
    item_review_idx = slab[:, _COL_IIDX].astype(jnp.int32)
    if mode == "Train":
        preds["reg"] = jnp.sum(slab[:, _COL_REG])     # scalar
    return preds, user_review_idx, item_review_idx


# ----------------------------------------------------------------------------
# Deterministic parameter construction.
# ----------------------------------------------------------------------------
def init_params(key, num_users, num_items, embed_dim, num_factors, num_layers):
    keys = jax.random.split(key, 4 + 2 * num_layers)
    params = {
        "user_embed": 0.1 * jax.random.normal(keys[0], (num_users, embed_dim), jnp.float32),
        "item_embed": 0.1 * jax.random.normal(keys[1], (num_items, embed_dim), jnp.float32),
    }
    mlp = []
    for i in range(num_layers):
        in_size = num_factors * 2 ** (num_layers - i)
        out_size = in_size // 2
        w = 0.1 * jax.random.normal(keys[2 + 2 * i], (in_size, out_size), jnp.float32)
        b = 0.01 * jnp.ones((1, out_size), jnp.float32)
        mlp.append((w, b))
    params["mlp"] = mlp
    wp = 0.1 * jax.random.normal(keys[2 + 2 * num_layers], (num_factors, 1), jnp.float32)
    bp = jnp.zeros((1, 1), jnp.float32)
    params["predict"] = (wp, bp)
    return params


if __name__ == "__main__":
    # small shapes: num_factors=8, num_layers=3  =>  embed_dim must be 32
    # (cat of user+item embeds = num_factors * 2**num_layers = 64).
    B, E, NF, NL = 8, 32, 8, 3
    NUM_USERS, NUM_ITEMS = 10, 12
    LU, LI = 8, 8

    key = jax.random.PRNGKey(0)
    k_param, k_u, k_i, k_uc, k_ic, k_ul, k_il = jax.random.split(key, 7)

    params = init_params(k_param, NUM_USERS, NUM_ITEMS, E, NF, NL)

    user = jax.random.randint(k_u, (B,), 0, NUM_USERS)
    item = jax.random.randint(k_i, (B,), 0, NUM_ITEMS)
    user_context = 0.1 * jax.random.normal(k_uc, (B, LU, E), jnp.float32)
    item_context = 0.1 * jax.random.normal(k_ic, (B, LI, E), jnp.float32)

    # key masks: 1.0 == padded position (every row has >= 1 valid review)
    u_len = jax.random.randint(k_ul, (B, 1), 1, LU + 1)
    i_len = jax.random.randint(k_il, (B, 1), 1, LI + 1)
    user_key_mask = (jnp.arange(LU)[None, :] >= u_len).astype(jnp.float32)
    item_key_mask = (jnp.arange(LI)[None, :] >= i_len).astype(jnp.float32)

    preds, u_idx, i_idx = rating_predictor_forward(
        params, user, item, user_context, item_context,
        user_key_mask, item_key_mask, mode="Train")

    jax.block_until_ready((preds, u_idx, i_idx))
    assert preds["rating_pred"].shape == (B,)
    assert preds["att"].shape == (B,)
    assert preds["reg"].shape == ()
    assert u_idx.shape == (B,) and i_idx.shape == (B,)
    print("KERNEL_OK")
</pallas_src>

<mosaic_0001>
module attributes {stable_mosaic.version = 11 : i64} {
  func.func @kernel(%arg0: i32, %arg1: memref<8x32xf32, #tpu.memory_space<vmem>>, %arg2: memref<8x32xf32, #tpu.memory_space<vmem>>, %arg3: memref<8x8x32xf32, #tpu.memory_space<vmem>>, %arg4: memref<8x8x32xf32, #tpu.memory_space<vmem>>, %arg5: memref<8x8xf32, #tpu.memory_space<vmem>>, %arg6: memref<8x8xf32, #tpu.memory_space<vmem>>, %arg7: memref<32x32xbf16, #tpu.memory_space<vmem>>, %arg8: memref<32x32xbf16, #tpu.memory_space<vmem>>, %arg9: memref<1x32xf32, #tpu.memory_space<vmem>>, %arg10: memref<32x16xbf16, #tpu.memory_space<vmem>>, %arg11: memref<1x16xf32, #tpu.memory_space<vmem>>, %arg12: memref<16x8xbf16, #tpu.memory_space<vmem>>, %arg13: memref<1x8xf32, #tpu.memory_space<vmem>>, %arg14: memref<1x8xf32, #tpu.memory_space<vmem>>, %arg15: memref<1x1xf32, #tpu.memory_space<vmem>>, %arg16: memref<8x128xf32, #tpu.memory_space<vmem>>) attributes {dimension_semantics = [#tpu.dimension_semantics<parallel>], iteration_bounds = array<i64: 1>, scalar_prefetch = 0 : i64, scratch_operands = 0 : i64, tpu.core_type = #tpu.core_type<tc>, window_params = [{transform_indices = @transform_0, window_bounds = array<i64: 8, 32>}, {transform_indices = @transform_1, window_bounds = array<i64: 8, 32>}, {transform_indices = @transform_2, window_bounds = array<i64: 8, 8, 32>}, {transform_indices = @transform_3, window_bounds = array<i64: 8, 8, 32>}, {transform_indices = @transform_4, window_bounds = array<i64: 8, 8>}, {transform_indices = @transform_5, window_bounds = array<i64: 8, 8>}, {pipeline_mode = #tpu.pipeline_mode<synchronous>, transform_indices = @transform_6, window_bounds = array<i64: 32, 32>}, {pipeline_mode = #tpu.pipeline_mode<synchronous>, transform_indices = @transform_7, window_bounds = array<i64: 32, 32>}, {pipeline_mode = #tpu.pipeline_mode<synchronous>, transform_indices = @transform_8, window_bounds = array<i64: 1, 32>}, {pipeline_mode = #tpu.pipeline_mode<synchronous>, transform_indices = @transform_9, window_bounds = array<i64: 32, 16>}, {pipeline_mode = #tpu.pipeline_mode<synchronous>, transform_indices = @transform_10, window_bounds = array<i64: 1, 16>}, {pipeline_mode = #tpu.pipeline_mode<synchronous>, transform_indices = @transform_11, window_bounds = array<i64: 16, 8>}, {pipeline_mode = #tpu.pipeline_mode<synchronous>, transform_indices = @transform_12, window_bounds = array<i64: 1, 8>}, {pipeline_mode = #tpu.pipeline_mode<synchronous>, transform_indices = @transform_13, window_bounds = array<i64: 1, 8>}, {pipeline_mode = #tpu.pipeline_mode<synchronous>, transform_indices = @transform_14, window_bounds = array<i64: 1, 1>}, {transform_indices = @transform_15, window_bounds = array<i64: 8, 128>}]} {
    %c0 = arith.constant 0 : index
    %c0_0 = arith.constant 0 : index
    %0 = vector.load %arg1[%c0, %c0_0] : memref<8x32xf32, #tpu.memory_space<vmem>>, vector<8x32xf32>
    %c0_1 = arith.constant 0 : index
    %c0_2 = arith.constant 0 : index
    %1 = vector.load %arg2[%c0_1, %c0_2] : memref<8x32xf32, #tpu.memory_space<vmem>>, vector<8x32xf32>
    %2 = arith.truncf %0 : vector<8x32xf32> to vector<8x32xbf16>
    %c0_3 = arith.constant 0 : index
    %c0_4 = arith.constant 0 : index
    %3 = vector.load %arg7[%c0_3, %c0_4] : memref<32x32xbf16, #tpu.memory_space<vmem>>, vector<32x32xbf16>
    %cst = arith.constant dense<0.000000e+00> : vector<8x32xf32>
    %4 = tpu.matmul %2, %3, %cst {dimension_numbers = #tpu.dot_dimension_numbers<[1], [0], [0], [1], [0, 0, 1, 1], [], []>} : vector<8x32xbf16>, vector<32x32xbf16>, vector<8x32xf32> -> vector<8x32xf32>
    %5 = arith.truncf %1 : vector<8x32xf32> to vector<8x32xbf16>
    %c0_5 = arith.constant 0 : index
    %c0_6 = arith.constant 0 : index
    %6 = vector.load %arg8[%c0_5, %c0_6] : memref<32x32xbf16, #tpu.memory_space<vmem>>, vector<32x32xbf16>
    %cst_7 = arith.constant dense<0.000000e+00> : vector<8x32xf32>
    %7 = tpu.matmul %5, %6, %cst_7 {dimension_numbers = #tpu.dot_dimension_numbers<[1], [0], [0], [1], [0, 0, 1, 1], [], []>} : vector<8x32xbf16>, vector<32x32xbf16>, vector<8x32xf32> -> vector<8x32xf32>
    %8 = arith.addf %4, %7 : vector<8x32xf32>
    %c0_8 = arith.constant 0 : index
    %c0_9 = arith.constant 0 : index
    %9 = vector.load %arg9[%c0_8, %c0_9] : memref<1x32xf32, #tpu.memory_space<vmem>>, vector<1x32xf32>
    %10 = vector.broadcast %9 : vector<1x32xf32> to vector<8x32xf32>
    %11 = arith.addf %8, %10 : vector<8x32xf32>
    %cst_10 = arith.constant 0.000000e+00 : f32
    %12 = vector.broadcast %cst_10 : f32 to vector<8x32xf32>
    %13 = arith.maximumf %11, %12 : vector<8x32xf32>
    %c0_11 = arith.constant 0 : index
    %c0_12 = arith.constant 0 : index
    %14 = vector.load %arg10[%c0_11, %c0_12] : memref<32x16xbf16, #tpu.memory_space<vmem>>, vector<32x16xbf16>
    %c0_13 = arith.constant 0 : index
    %c0_14 = arith.constant 0 : index
    %15 = vector.load %arg11[%c0_13, %c0_14] : memref<1x16xf32, #tpu.memory_space<vmem>>, vector<1x16xf32>
    %16 = arith.truncf %13 : vector<8x32xf32> to vector<8x32xbf16>
    %cst_15 = arith.constant dense<0.000000e+00> : vector<8x16xf32>
    %17 = tpu.matmul %16, %14, %cst_15 {dimension_numbers = #tpu.dot_dimension_numbers<[1], [0], [0], [1], [0, 0, 1, 1], [], []>} : vector<8x32xbf16>, vector<32x16xbf16>, vector<8x16xf32> -> vector<8x16xf32>
    %18 = vector.broadcast %15 : vector<1x16xf32> to vector<8x16xf32>
    %19 = arith.addf %17, %18 : vector<8x16xf32>
    %cst_16 = arith.constant 0.000000e+00 : f32
    %20 = vector.broadcast %cst_16 : f32 to vector<8x16xf32>
    %21 = arith.maximumf %19, %20 : vector<8x16xf32>
    %c0_17 = arith.constant 0 : index
    %c0_18 = arith.constant 0 : index
    %22 = vector.load %arg12[%c0_17, %c0_18] : memref<16x8xbf16, #tpu.memory_space<vmem>>, vector<16x8xbf16>
    %c0_19 = arith.constant 0 : index
    %c0_20 = arith.constant 0 : index
    %23 = vector.load %arg13[%c0_19, %c0_20] : memref<1x8xf32, #tpu.memory_space<vmem>>, vector<1x8xf32>
    %24 = arith.truncf %21 : vector<8x16xf32> to vector<8x16xbf16>
    %cst_21 = arith.constant dense<0.000000e+00> : vector<8x8xf32>
    %25 = tpu.matmul %24, %22, %cst_21 {dimension_numbers = #tpu.dot_dimension_numbers<[1], [0], [0], [1], [0, 0, 1, 1], [], []>} : vector<8x16xbf16>, vector<16x8xbf16>, vector<8x8xf32> -> vector<8x8xf32>
    %26 = vector.broadcast %23 : vector<1x8xf32> to vector<8x8xf32>
    %27 = arith.addf %25, %26 : vector<8x8xf32>
    %cst_22 = arith.constant 0.000000e+00 : f32
    %28 = vector.broadcast %cst_22 : f32 to vector<8x8xf32>
    %29 = arith.maximumf %27, %28 : vector<8x8xf32>
    %c0_23 = arith.constant 0 : index
    %c0_24 = arith.constant 0 : index
    %30 = vector.load %arg14[%c0_23, %c0_24] : memref<1x8xf32, #tpu.memory_space<vmem>>, vector<1x8xf32>
    %31 = vector.broadcast %30 : vector<1x8xf32> to vector<8x8xf32>
    %32 = arith.mulf %29, %31 : vector<8x8xf32>
    %cst_25 = arith.constant dense<0.000000e+00> : vector<8xf32>
    %33 = vector.multi_reduction <add>, %32, %cst_25 [1] : vector<8x8xf32> to vector<8xf32>
    %34 = vector.shape_cast %33 : vector<8xf32> to vector<8x1xf32>
    %c0_26 = arith.constant 0 : index
    %c0_27 = arith.constant 0 : index
    %35 = vector.load %arg15[%c0_26, %c0_27] : memref<1x1xf32, #tpu.memory_space<vmem>>, vector<1x1xf32>
    %36 = vector.broadcast %35 : vector<1x1xf32> to vector<8x1xf32>
    %37 = arith.addf %34, %36 : vector<8x1xf32>
    %c0_28 = arith.constant 0 : index
    %c0_29 = arith.constant 0 : index
    %38 = vector.load %arg5[%c0_28, %c0_29] : memref<8x8xf32, #tpu.memory_space<vmem>>, vector<8x8xf32>
    %c0_30 = arith.constant 0 : index
    %c0_31 = arith.constant 0 : index
    %c0_32 = arith.constant 0 : index
    %39 = vector.load %arg3[%c0_30, %c0_31, %c0_32] : memref<8x8x32xf32, #tpu.memory_space<vmem>>, vector<8x1x32xf32>
    %40 = vector.shape_cast %39 : vector<8x1x32xf32> to vector<8x32xf32>
    %41 = arith.mulf %1, %40 : vector<8x32xf32>
    %cst_33 = arith.constant dense<0.000000e+00> : vector<8xf32>
    %42 = vector.multi_reduction <add>, %41, %cst_33 [1] : vector<8x32xf32> to vector<8xf32>
    %43 = vector.shape_cast %42 : vector<8xf32> to vector<8x1xf32>
    %c0_34 = arith.constant 0 : index
    %c1 = arith.constant 1 : index
    %c0_35 = arith.constant 0 : index
    %44 = vector.load %arg3[%c0_34, %c1, %c0_35] : memref<8x8x32xf32, #tpu.memory_space<vmem>>, vector<8x1x32xf32>
    %45 = vector.shape_cast %44 : vector<8x1x32xf32> to vector<8x32xf32>
    %46 = arith.mulf %1, %45 : vector<8x32xf32>
    %cst_36 = arith.constant dense<0.000000e+00> : vector<8xf32>
    %47 = vector.multi_reduction <add>, %46, %cst_36 [1] : vector<8x32xf32> to vector<8xf32>
    %48 = vector.shape_cast %47 : vector<8xf32> to vector<8x1xf32>
    %c0_37 = arith.constant 0 : index
    %c2 = arith.constant 2 : index
    %c0_38 = arith.constant 0 : index
    %49 = vector.load %arg3[%c0_37, %c2, %c0_38] : memref<8x8x32xf32, #tpu.memory_space<vmem>>, vector<8x1x32xf32>
    %50 = vector.shape_cast %49 : vector<8x1x32xf32> to vector<8x32xf32>
    %51 = arith.mulf %1, %50 : vector<8x32xf32>
    %cst_39 = arith.constant dense<0.000000e+00> : vector<8xf32>
    %52 = vector.multi_reduction <add>, %51, %cst_39 [1] : vector<8x32xf32> to vector<8xf32>
    %53 = vector.shape_cast %52 : vector<8xf32> to vector<8x1xf32>
    %c0_40 = arith.constant 0 : index
    %c3 = arith.constant 3 : index
    %c0_41 = arith.constant 0 : index
    %54 = vector.load %arg3[%c0_40, %c3, %c0_41] : memref<8x8x32xf32, #tpu.memory_space<vmem>>, vector<8x1x32xf32>
    %55 = vector.shape_cast %54 : vector<8x1x32xf32> to vector<8x32xf32>
    %56 = arith.mulf %1, %55 : vector<8x32xf32>
    %cst_42 = arith.constant dense<0.000000e+00> : vector<8xf32>
    %57 = vector.multi_reduction <add>, %56, %cst_42 [1] : vector<8x32xf32> to vector<8xf32>
    %58 = vector.shape_cast %57 : vector<8xf32> to vector<8x1xf32>
    %c0_43 = arith.constant 0 : index
    %c4 = arith.constant 4 : index
    %c0_44 = arith.constant 0 : index
    %59 = vector.load %arg3[%c0_43, %c4, %c0_44] : memref<8x8x32xf32, #tpu.memory_space<vmem>>, vector<8x1x32xf32>
    %60 = vector.shape_cast %59 : vector<8x1x32xf32> to vector<8x32xf32>
    %61 = arith.mulf %1, %60 : vector<8x32xf32>
    %cst_45 = arith.constant dense<0.000000e+00> : vector<8xf32>
    %62 = vector.multi_reduction <add>, %61, %cst_45 [1] : vector<8x32xf32> to vector<8xf32>
    %63 = vector.shape_cast %62 : vector<8xf32> to vector<8x1xf32>
    %c0_46 = arith.constant 0 : index
    %c5 = arith.constant 5 : index
    %c0_47 = arith.constant 0 : index
    %64 = vector.load %arg3[%c0_46, %c5, %c0_47] : memref<8x8x32xf32, #tpu.memory_space<vmem>>, vector<8x1x32xf32>
    %65 = vector.shape_cast %64 : vector<8x1x32xf32> to vector<8x32xf32>
    %66 = arith.mulf %1, %65 : vector<8x32xf32>
    %cst_48 = arith.constant dense<0.000000e+00> : vector<8xf32>
    %67 = vector.multi_reduction <add>, %66, %cst_48 [1] : vector<8x32xf32> to vector<8xf32>
    %68 = vector.shape_cast %67 : vector<8xf32> to vector<8x1xf32>
    %c0_49 = arith.constant 0 : index
    %c6 = arith.constant 6 : index
    %c0_50 = arith.constant 0 : index
    %69 = vector.load %arg3[%c0_49, %c6, %c0_50] : memref<8x8x32xf32, #tpu.memory_space<vmem>>, vector<8x1x32xf32>
    %70 = vector.shape_cast %69 : vector<8x1x32xf32> to vector<8x32xf32>
    %71 = arith.mulf %1, %70 : vector<8x32xf32>
    %cst_51 = arith.constant dense<0.000000e+00> : vector<8xf32>
    %72 = vector.multi_reduction <add>, %71, %cst_51 [1] : vector<8x32xf32> to vector<8xf32>
    %73 = vector.shape_cast %72 : vector<8xf32> to vector<8x1xf32>
    %c0_52 = arith.constant 0 : index
    %c7 = arith.constant 7 : index
    %c0_53 = arith.constant 0 : index
    %74 = vector.load %arg3[%c0_52, %c7, %c0_53] : memref<8x8x32xf32, #tpu.memory_space<vmem>>, vector<8x1x32xf32>
    %75 = vector.shape_cast %74 : vector<8x1x32xf32> to vector<8x32xf32>
    %76 = arith.mulf %1, %75 : vector<8x32xf32>
    %cst_54 = arith.constant dense<0.000000e+00> : vector<8xf32>
    %77 = vector.multi_reduction <add>, %76, %cst_54 [1] : vector<8x32xf32> to vector<8xf32>
    %78 = vector.shape_cast %77 : vector<8xf32> to vector<8x1xf32>
    %79 = tpu.concatenate %43, %48, %53, %58, %63, %68, %73, %78 in 1 : vector<8x1xf32>, vector<8x1xf32>, vector<8x1xf32>, vector<8x1xf32>, vector<8x1xf32>, vector<8x1xf32>, vector<8x1xf32>, vector<8x1xf32> -> vector<8x8xf32>
    %cst_55 = arith.constant 0.176776692 : f32
    %80 = vector.broadcast %cst_55 : f32 to vector<8x8xf32>
    %81 = arith.mulf %79, %80 : vector<8x8xf32>
    %cst_56 = arith.constant 5.000000e-01 : f32
    %82 = vector.broadcast %cst_56 : f32 to vector<8x8xf32>
    %83 = arith.cmpf ogt, %38, %82 : vector<8x8xf32>
    %cst_57 = arith.constant -1.000000e+30 : f32
    %84 = vector.broadcast %cst_57 : f32 to vector<8x8xf32>
    %85 = arith.select %83, %84, %81 : vector<8x8xi1>, vector<8x8xf32>
    %cst_58 = arith.constant dense<0xFF800000> : vector<8xf32>
    %86 = vector.multi_reduction <maximumf>, %85, %cst_58 [1] : vector<8x8xf32> to vector<8xf32>
    %87 = vector.shape_cast %86 : vector<8xf32> to vector<8x1xf32>
    %88 = vector.broadcast %87 : vector<8x1xf32> to vector<8x8xf32>
    %89 = arith.subf %85, %88 : vector<8x8xf32>
    %90 = math.exp %89 : vector<8x8xf32>
    %cst_59 = arith.constant dense<0.000000e+00> : vector<8xf32>
    %91 = vector.multi_reduction <add>, %90, %cst_59 [1] : vector<8x8xf32> to vector<8xf32>
    %92 = vector.shape_cast %91 : vector<8xf32> to vector<8x1xf32>
    %93 = tpu.reciprocal %92 {approx = true} : vector<8x1xf32> -> vector<8x1xf32>
    %94 = vector.broadcast %93 : vector<8x1xf32> to vector<8x8xf32>
    %95 = arith.mulf %90, %94 : vector<8x8xf32>
    %96 = vector.extract_strided_slice %95 {offsets = [0, 0], sizes = [8, 1], strides = [1, 1]} : vector<8x8xf32> to vector<8x1xf32>
    %c0_60 = arith.constant 0 : index
    %c0_61 = arith.constant 0 : index
    %c0_62 = arith.constant 0 : index
    %97 = vector.load %arg3[%c0_60, %c0_61, %c0_62] : memref<8x8x32xf32, #tpu.memory_space<vmem>>, vector<8x1x32xf32>
    %98 = vector.shape_cast %97 : vector<8x1x32xf32> to vector<8x32xf32>
    %99 = vector.broadcast %96 : vector<8x1xf32> to vector<8x32xf32>
    %100 = arith.mulf %99, %98 : vector<8x32xf32>
    %101 = vector.extract_strided_slice %95 {offsets = [0, 1], sizes = [8, 1], strides = [1, 1]} : vector<8x8xf32> to vector<8x1xf32>
    %c0_63 = arith.constant 0 : index
    %c1_64 = arith.constant 1 : index
    %c0_65 = arith.constant 0 : index
    %102 = vector.load %arg3[%c0_63, %c1_64, %c0_65] : memref<8x8x32xf32, #tpu.memory_space<vmem>>, vector<8x1x32xf32>
    %103 = vector.shape_cast %102 : vector<8x1x32xf32> to vector<8x32xf32>
    %104 = vector.broadcast %101 : vector<8x1xf32> to vector<8x32xf32>
    %105 = arith.mulf %104, %103 : vector<8x32xf32>
    %106 = arith.addf %100, %105 : vector<8x32xf32>
    %107 = vector.extract_strided_slice %95 {offsets = [0, 2], sizes = [8, 1], strides = [1, 1]} : vector<8x8xf32> to vector<8x1xf32>
    %c0_66 = arith.constant 0 : index
    %c2_67 = arith.constant 2 : index
    %c0_68 = arith.constant 0 : index
    %108 = vector.load %arg3[%c0_66, %c2_67, %c0_68] : memref<8x8x32xf32, #tpu.memory_space<vmem>>, vector<8x1x32xf32>
    %109 = vector.shape_cast %108 : vector<8x1x32xf32> to vector<8x32xf32>
    %110 = vector.broadcast %107 : vector<8x1xf32> to vector<8x32xf32>
    %111 = arith.mulf %110, %109 : vector<8x32xf32>
    %112 = arith.addf %106, %111 : vector<8x32xf32>
    %113 = vector.extract_strided_slice %95 {offsets = [0, 3], sizes = [8, 1], strides = [1, 1]} : vector<8x8xf32> to vector<8x1xf32>
    %c0_69 = arith.constant 0 : index
    %c3_70 = arith.constant 3 : index
    %c0_71 = arith.constant 0 : index
    %114 = vector.load %arg3[%c0_69, %c3_70, %c0_71] : memref<8x8x32xf32, #tpu.memory_space<vmem>>, vector<8x1x32xf32>
    %115 = vector.shape_cast %114 : vector<8x1x32xf32> to vector<8x32xf32>
    %116 = vector.broadcast %113 : vector<8x1xf32> to vector<8x32xf32>
    %117 = arith.mulf %116, %115 : vector<8x32xf32>
    %118 = arith.addf %112, %117 : vector<8x32xf32>
    %119 = vector.extract_strided_slice %95 {offsets = [0, 4], sizes = [8, 1], strides = [1, 1]} : vector<8x8xf32> to vector<8x1xf32>
    %c0_72 = arith.constant 0 : index
    %c4_73 = arith.constant 4 : index
    %c0_74 = arith.constant 0 : index
    %120 = vector.load %arg3[%c0_72, %c4_73, %c0_74] : memref<8x8x32xf32, #tpu.memory_space<vmem>>, vector<8x1x32xf32>
    %121 = vector.shape_cast %120 : vector<8x1x32xf32> to vector<8x32xf32>
    %122 = vector.broadcast %119 : vector<8x1xf32> to vector<8x32xf32>
    %123 = arith.mulf %122, %121 : vector<8x32xf32>
    %124 = arith.addf %118, %123 : vector<8x32xf32>
    %125 = vector.extract_strided_slice %95 {offsets = [0, 5], sizes = [8, 1], strides = [1, 1]} : vector<8x8xf32> to vector<8x1xf32>
    %c0_75 = arith.constant 0 : index
    %c5_76 = arith.constant 5 : index
    %c0_77 = arith.constant 0 : index
    %126 = vector.load %arg3[%c0_75, %c5_76, %c0_77] : memref<8x8x32xf32, #tpu.memory_space<vmem>>, vector<8x1x32xf32>
    %127 = vector.shape_cast %126 : vector<8x1x32xf32> to vector<8x32xf32>
    %128 = vector.broadcast %125 : vector<8x1xf32> to vector<8x32xf32>
    %129 = arith.mulf %128, %127 : vector<8x32xf32>
    %130 = arith.addf %124, %129 : vector<8x32xf32>
    %131 = vector.extract_strided_slice %95 {offsets = [0, 6], sizes = [8, 1], strides = [1, 1]} : vector<8x8xf32> to vector<8x1xf32>
    %c0_78 = arith.constant 0 : index
    %c6_79 = arith.constant 6 : index
    %c0_80 = arith.constant 0 : index
    %132 = vector.load %arg3[%c0_78, %c6_79, %c0_80] : memref<8x8x32xf32, #tpu.memory_space<vmem>>, vector<8x1x32xf32>
    %133 = vector.shape_cast %132 : vector<8x1x32xf32> to vector<8x32xf32>
    %134 = vector.broadcast %131 : vector<8x1xf32> to vector<8x32xf32>
    %135 = arith.mulf %134, %133 : vector<8x32xf32>
    %136 = arith.addf %130, %135 : vector<8x32xf32>
    %137 = vector.extract_strided_slice %95 {offsets = [0, 7], sizes = [8, 1], strides = [1, 1]} : vector<8x8xf32> to vector<8x1xf32>
    %c0_81 = arith.constant 0 : index
    %c7_82 = arith.constant 7 : index
    %c0_83 = arith.constant 0 : index
    %138 = vector.load %arg3[%c0_81, %c7_82, %c0_83] : memref<8x8x32xf32, #tpu.memory_space<vmem>>, vector<8x1x32xf32>
    %139 = vector.shape_cast %138 : vector<8x1x32xf32> to vector<8x32xf32>
    %140 = vector.broadcast %137 : vector<8x1xf32> to vector<8x32xf32>
    %141 = arith.mulf %140, %139 : vector<8x32xf32>
    %142 = arith.addf %136, %141 : vector<8x32xf32>
    %143 = tpu.iota {dimensions = array<i32: 1>} : vector<8x8xi32>
    %144 = vector.broadcast %87 : vector<8x1xf32> to vector<8x8xf32>
    %145 = arith.cmpf oeq, %85, %144 : vector<8x8xf32>
    %c1073741824_i32 = arith.constant 1073741824 : i32
    %146 = vector.broadcast %c1073741824_i32 : i32 to vector<8x8xi32>
    %147 = arith.select %145, %143, %146 : vector<8x8xi1>, vector<8x8xi32>
    %cst_84 = arith.constant dense<2147483647> : vector<8xi32>
    %148 = vector.multi_reduction <minsi>, %147, %cst_84 [1] : vector<8x8xi32> to vector<8xi32>
    %149 = vector.shape_cast %148 : vector<8xi32> to vector<8x1xi32>
    %c0_85 = arith.constant 0 : index
    %c0_86 = arith.constant 0 : index
    %150 = vector.load %arg6[%c0_85, %c0_86] : memref<8x8xf32, #tpu.memory_space<vmem>>, vector<8x8xf32>
    %c0_87 = arith.constant 0 : index
    %c0_88 = arith.constant 0 : index
    %c0_89 = arith.constant 0 : index
    %151 = vector.load %arg4[%c0_87, %c0_88, %c0_89] : memref<8x8x32xf32, #tpu.memory_space<vmem>>, vector<8x1x32xf32>
    %152 = vector.shape_cast %151 : vector<8x1x32xf32> to vector<8x32xf32>
    %153 = arith.mulf %0, %152 : vector<8x32xf32>
    %cst_90 = arith.constant dense<0.000000e+00> : vector<8xf32>
    %154 = vector.multi_reduction <add>, %153, %cst_90 [1] : vector<8x32xf32> to vector<8xf32>
    %155 = vector.shape_cast %154 : vector<8xf32> to vector<8x1xf32>
    %c0_91 = arith.constant 0 : index
    %c1_92 = arith.constant 1 : index
    %c0_93 = arith.constant 0 : index
    %156 = vector.load %arg4[%c0_91, %c1_92, %c0_93] : memref<8x8x32xf32, #tpu.memory_space<vmem>>, vector<8x1x32xf32>
    %157 = vector.shape_cast %156 : vector<8x1x32xf32> to vector<8x32xf32>
    %158 = arith.mulf %0, %157 : vector<8x32xf32>
    %cst_94 = arith.constant dense<0.000000e+00> : vector<8xf32>
    %159 = vector.multi_reduction <add>, %158, %cst_94 [1] : vector<8x32xf32> to vector<8xf32>
    %160 = vector.shape_cast %159 : vector<8xf32> to vector<8x1xf32>
    %c0_95 = arith.constant 0 : index
    %c2_96 = arith.constant 2 : index
    %c0_97 = arith.constant 0 : index
    %161 = vector.load %arg4[%c0_95, %c2_96, %c0_97] : memref<8x8x32xf32, #tpu.memory_space<vmem>>, vector<8x1x32xf32>
    %162 = vector.shape_cast %161 : vector<8x1x32xf32> to vector<8x32xf32>
    %163 = arith.mulf %0, %162 : vector<8x32xf32>
    %cst_98 = arith.constant dense<0.000000e+00> : vector<8xf32>
    %164 = vector.multi_reduction <add>, %163, %cst_98 [1] : vector<8x32xf32> to vector<8xf32>
    %165 = vector.shape_cast %164 : vector<8xf32> to vector<8x1xf32>
    %c0_99 = arith.constant 0 : index
    %c3_100 = arith.constant 3 : index
    %c0_101 = arith.constant 0 : index
    %166 = vector.load %arg4[%c0_99, %c3_100, %c0_101] : memref<8x8x32xf32, #tpu.memory_space<vmem>>, vector<8x1x32xf32>
    %167 = vector.shape_cast %166 : vector<8x1x32xf32> to vector<8x32xf32>
    %168 = arith.mulf %0, %167 : vector<8x32xf32>
    %cst_102 = arith.constant dense<0.000000e+00> : vector<8xf32>
    %169 = vector.multi_reduction <add>, %168, %cst_102 [1] : vector<8x32xf32> to vector<8xf32>
    %170 = vector.shape_cast %169 : vector<8xf32> to vector<8x1xf32>
    %c0_103 = arith.constant 0 : index
    %c4_104 = arith.constant 4 : index
    %c0_105 = arith.constant 0 : index
    %171 = vector.load %arg4[%c0_103, %c4_104, %c0_105] : memref<8x8x32xf32, #tpu.memory_space<vmem>>, vector<8x1x32xf32>
    %172 = vector.shape_cast %171 : vector<8x1x32xf32> to vector<8x32xf32>
    %173 = arith.mulf %0, %172 : vector<8x32xf32>
    %cst_106 = arith.constant dense<0.000000e+00> : vector<8xf32>
    %174 = vector.multi_reduction <add>, %173, %cst_106 [1] : vector<8x32xf32> to vector<8xf32>
    %175 = vector.shape_cast %174 : vector<8xf32> to vector<8x1xf32>
    %c0_107 = arith.constant 0 : index
    %c5_108 = arith.constant 5 : index
    %c0_109 = arith.constant 0 : index
    %176 = vector.load %arg4[%c0_107, %c5_108, %c0_109] : memref<8x8x32xf32, #tpu.memory_space<vmem>>, vector<8x1x32xf32>
    %177 = vector.shape_cast %176 : vector<8x1x32xf32> to vector<8x32xf32>
    %178 = arith.mulf %0, %177 : vector<8x32xf32>
    %cst_110 = arith.constant dense<0.000000e+00> : vector<8xf32>
    %179 = vector.multi_reduction <add>, %178, %cst_110 [1] : vector<8x32xf32> to vector<8xf32>
    %180 = vector.shape_cast %179 : vector<8xf32> to vector<8x1xf32>
    %c0_111 = arith.constant 0 : index
    %c6_112 = arith.constant 6 : index
    %c0_113 = arith.constant 0 : index
    %181 = vector.load %arg4[%c0_111, %c6_112, %c0_113] : memref<8x8x32xf32, #tpu.memory_space<vmem>>, vector<8x1x32xf32>
    %182 = vector.shape_cast %181 : vector<8x1x32xf32> to vector<8x32xf32>
    %183 = arith.mulf %0, %182 : vector<8x32xf32>
    %cst_114 = arith.constant dense<0.000000e+00> : vector<8xf32>
    %184 = vector.multi_reduction <add>, %183, %cst_114 [1] : vector<8x32xf32> to vector<8xf32>
    %185 = vector.shape_cast %184 : vector<8xf32> to vector<8x1xf32>
    %c0_115 = arith.constant 0 : index
    %c7_116 = arith.constant 7 : index
    %c0_117 = arith.constant 0 : index
    %186 = vector.load %arg4[%c0_115, %c7_116, %c0_117] : memref<8x8x32xf32, #tpu.memory_space<vmem>>, vector<8x1x32xf32>
    %187 = vector.shape_cast %186 : vector<8x1x32xf32> to vector<8x32xf32>
    %188 = arith.mulf %0, %187 : vector<8x32xf32>
    %cst_118 = arith.constant dense<0.000000e+00> : vector<8xf32>
    %189 = vector.multi_reduction <add>, %188, %cst_118 [1] : vector<8x32xf32> to vector<8xf32>
    %190 = vector.shape_cast %189 : vector<8xf32> to vector<8x1xf32>
    %191 = tpu.concatenate %155, %160, %165, %170, %175, %180, %185, %190 in 1 : vector<8x1xf32>, vector<8x1xf32>, vector<8x1xf32>, vector<8x1xf32>, vector<8x1xf32>, vector<8x1xf32>, vector<8x1xf32>, vector<8x1xf32> -> vector<8x8xf32>
    %cst_119 = arith.constant 0.176776692 : f32
    %192 = vector.broadcast %cst_119 : f32 to vector<8x8xf32>
    %193 = arith.mulf %191, %192 : vector<8x8xf32>
    %cst_120 = arith.constant 5.000000e-01 : f32
    %194 = vector.broadcast %cst_120 : f32 to vector<8x8xf32>
    %195 = arith.cmpf ogt, %150, %194 : vector<8x8xf32>
    %cst_121 = arith.constant -1.000000e+30 : f32
    %196 = vector.broadcast %cst_121 : f32 to vector<8x8xf32>
    %197 = arith.select %195, %196, %193 : vector<8x8xi1>, vector<8x8xf32>
    %cst_122 = arith.constant dense<0xFF800000> : vector<8xf32>
    %198 = vector.multi_reduction <maximumf>, %197, %cst_122 [1] : vector<8x8xf32> to vector<8xf32>
    %199 = vector.shape_cast %198 : vector<8xf32> to vector<8x1xf32>
    %200 = vector.broadcast %199 : vector<8x1xf32> to vector<8x8xf32>
    %201 = arith.subf %197, %200 : vector<8x8xf32>
    %202 = math.exp %201 : vector<8x8xf32>
    %cst_123 = arith.constant dense<0.000000e+00> : vector<8xf32>
    %203 = vector.multi_reduction <add>, %202, %cst_123 [1] : vector<8x8xf32> to vector<8xf32>
    %204 = vector.shape_cast %203 : vector<8xf32> to vector<8x1xf32>
    %205 = tpu.reciprocal %204 {approx = true} : vector<8x1xf32> -> vector<8x1xf32>
    %206 = vector.broadcast %205 : vector<8x1xf32> to vector<8x8xf32>
    %207 = arith.mulf %202, %206 : vector<8x8xf32>
    %208 = vector.extract_strided_slice %207 {offsets = [0, 0], sizes = [8, 1], strides = [1, 1]} : vector<8x8xf32> to vector<8x1xf32>
    %c0_124 = arith.constant 0 : index
    %c0_125 = arith.constant 0 : index
    %c0_126 = arith.constant 0 : index
    %209 = vector.load %arg4[%c0_124, %c0_125, %c0_126] : memref<8x8x32xf32, #tpu.memory_space<vmem>>, vector<8x1x32xf32>
    %210 = vector.shape_cast %209 : vector<8x1x32xf32> to vector<8x32xf32>
    %211 = vector.broadcast %208 : vector<8x1xf32> to vector<8x32xf32>
    %212 = arith.mulf %211, %210 : vector<8x32xf32>
    %213 = vector.extract_strided_slice %207 {offsets = [0, 1], sizes = [8, 1], strides = [1, 1]} : vector<8x8xf32> to vector<8x1xf32>
    %c0_127 = arith.constant 0 : index
    %c1_128 = arith.constant 1 : index
    %c0_129 = arith.constant 0 : index
    %214 = vector.load %arg4[%c0_127, %c1_128, %c0_129] : memref<8x8x32xf32, #tpu.memory_space<vmem>>, vector<8x1x32xf32>
    %215 = vector.shape_cast %214 : vector<8x1x32xf32> to vector<8x32xf32>
    %216 = vector.broadcast %213 : vector<8x1xf32> to vector<8x32xf32>
    %217 = arith.mulf %216, %215 : vector<8x32xf32>
    %218 = arith.addf %212, %217 : vector<8x32xf32>
    %219 = vector.extract_strided_slice %207 {offsets = [0, 2], sizes = [8, 1], strides = [1, 1]} : vector<8x8xf32> to vector<8x1xf32>
    %c0_130 = arith.constant 0 : index
    %c2_131 = arith.constant 2 : index
    %c0_132 = arith.constant 0 : index
    %220 = vector.load %arg4[%c0_130, %c2_131, %c0_132] : memref<8x8x32xf32, #tpu.memory_space<vmem>>, vector<8x1x32xf32>
    %221 = vector.shape_cast %220 : vector<8x1x32xf32> to vector<8x32xf32>
    %222 = vector.broadcast %219 : vector<8x1xf32> to vector<8x32xf32>
    %223 = arith.mulf %222, %221 : vector<8x32xf32>
    %224 = arith.addf %218, %223 : vector<8x32xf32>
    %225 = vector.extract_strided_slice %207 {offsets = [0, 3], sizes = [8, 1], strides = [1, 1]} : vector<8x8xf32> to vector<8x1xf32>
    %c0_133 = arith.constant 0 : index
    %c3_134 = arith.constant 3 : index
    %c0_135 = arith.constant 0 : index
    %226 = vector.load %arg4[%c0_133, %c3_134, %c0_135] : memref<8x8x32xf32, #tpu.memory_space<vmem>>, vector<8x1x32xf32>
    %227 = vector.shape_cast %226 : vector<8x1x32xf32> to vector<8x32xf32>
    %228 = vector.broadcast %225 : vector<8x1xf32> to vector<8x32xf32>
    %229 = arith.mulf %228, %227 : vector<8x32xf32>
    %230 = arith.addf %224, %229 : vector<8x32xf32>
    %231 = vector.extract_strided_slice %207 {offsets = [0, 4], sizes = [8, 1], strides = [1, 1]} : vector<8x8xf32> to vector<8x1xf32>
    %c0_136 = arith.constant 0 : index
    %c4_137 = arith.constant 4 : index
    %c0_138 = arith.constant 0 : index
    %232 = vector.load %arg4[%c0_136, %c4_137, %c0_138] : memref<8x8x32xf32, #tpu.memory_space<vmem>>, vector<8x1x32xf32>
    %233 = vector.shape_cast %232 : vector<8x1x32xf32> to vector<8x32xf32>
    %234 = vector.broadcast %231 : vector<8x1xf32> to vector<8x32xf32>
    %235 = arith.mulf %234, %233 : vector<8x32xf32>
    %236 = arith.addf %230, %235 : vector<8x32xf32>
    %237 = vector.extract_strided_slice %207 {offsets = [0, 5], sizes = [8, 1], strides = [1, 1]} : vector<8x8xf32> to vector<8x1xf32>
    %c0_139 = arith.constant 0 : index
    %c5_140 = arith.constant 5 : index
    %c0_141 = arith.constant 0 : index
    %238 = vector.load %arg4[%c0_139, %c5_140, %c0_141] : memref<8x8x32xf32, #tpu.memory_space<vmem>>, vector<8x1x32xf32>
    %239 = vector.shape_cast %238 : vector<8x1x32xf32> to vector<8x32xf32>
    %240 = vector.broadcast %237 : vector<8x1xf32> to vector<8x32xf32>
    %241 = arith.mulf %240, %239 : vector<8x32xf32>
    %242 = arith.addf %236, %241 : vector<8x32xf32>
    %243 = vector.extract_strided_slice %207 {offsets = [0, 6], sizes = [8, 1], strides = [1, 1]} : vector<8x8xf32> to vector<8x1xf32>
    %c0_142 = arith.constant 0 : index
    %c6_143 = arith.constant 6 : index
    %c0_144 = arith.constant 0 : index
    %244 = vector.load %arg4[%c0_142, %c6_143, %c0_144] : memref<8x8x32xf32, #tpu.memory_space<vmem>>, vector<8x1x32xf32>
    %245 = vector.shape_cast %244 : vector<8x1x32xf32> to vector<8x32xf32>
    %246 = vector.broadcast %243 : vector<8x1xf32> to vector<8x32xf32>
    %247 = arith.mulf %246, %245 : vector<8x32xf32>
    %248 = arith.addf %242, %247 : vector<8x32xf32>
    %249 = vector.extract_strided_slice %207 {offsets = [0, 7], sizes = [8, 1], strides = [1, 1]} : vector<8x8xf32> to vector<8x1xf32>
    %c0_145 = arith.constant 0 : index
    %c7_146 = arith.constant 7 : index
    %c0_147 = arith.constant 0 : index
    %250 = vector.load %arg4[%c0_145, %c7_146, %c0_147] : memref<8x8x32xf32, #tpu.memory_space<vmem>>, vector<8x1x32xf32>
    %251 = vector.shape_cast %250 : vector<8x1x32xf32> to vector<8x32xf32>
    %252 = vector.broadcast %249 : vector<8x1xf32> to vector<8x32xf32>
    %253 = arith.mulf %252, %251 : vector<8x32xf32>
    %254 = arith.addf %248, %253 : vector<8x32xf32>
    %255 = tpu.iota {dimensions = array<i32: 1>} : vector<8x8xi32>
    %256 = vector.broadcast %199 : vector<8x1xf32> to vector<8x8xf32>
    %257 = arith.cmpf oeq, %197, %256 : vector<8x8xf32>
    %c1073741824_i32_148 = arith.constant 1073741824 : i32
    %258 = vector.broadcast %c1073741824_i32_148 : i32 to vector<8x8xi32>
    %259 = arith.select %257, %255, %258 : vector<8x8xi1>, vector<8x8xi32>
    %cst_149 = arith.constant dense<2147483647> : vector<8xi32>
    %260 = vector.multi_reduction <minsi>, %259, %cst_149 [1] : vector<8x8xi32> to vector<8xi32>
    %261 = vector.shape_cast %260 : vector<8xi32> to vector<8x1xi32>
    %262 = arith.mulf %142, %254 : vector<8x32xf32>
    %cst_150 = arith.constant dense<0.000000e+00> : vector<8xf32>
    %263 = vector.multi_reduction <add>, %262, %cst_150 [1] : vector<8x32xf32> to vector<8xf32>
    %264 = vector.shape_cast %263 : vector<8xf32> to vector<8x1xf32>
    %265 = arith.mulf %0, %0 : vector<8x32xf32>
    %cst_151 = arith.constant dense<0.000000e+00> : vector<8xf32>
    %266 = vector.multi_reduction <add>, %265, %cst_151 [1] : vector<8x32xf32> to vector<8xf32>
    %267 = vector.shape_cast %266 : vector<8xf32> to vector<8x1xf32>
    %268 = arith.mulf %1, %1 : vector<8x32xf32>
    %cst_152 = arith.constant dense<0.000000e+00> : vector<8xf32>
    %269 = vector.multi_reduction <add>, %268, %cst_152 [1] : vector<8x32xf32> to vector<8xf32>
    %270 = vector.shape_cast %269 : vector<8xf32> to vector<8x1xf32>
    %271 = arith.addf %267, %270 : vector<8x1xf32>
    %272 = tpu.iota {dimensions = array<i32: 1>} : vector<8x128xi32>
    %c0_i32 = arith.constant 0 : i32
    %273 = vector.broadcast %c0_i32 : i32 to vector<8x128xi32>
    %274 = arith.cmpi eq, %272, %273 : vector<8x128xi32>
    %cst_153 = arith.constant 0.000000e+00 : f32
    %275 = vector.shape_cast %37 : vector<8x1xf32> to vector<8x1xf32>
    %276 = vector.broadcast %275 : vector<8x1xf32> to vector<8x128xf32>
    %277 = vector.broadcast %cst_153 : f32 to vector<8x128xf32>
    %278 = arith.select %274, %276, %277 : vector<8x128xi1>, vector<8x128xf32>
    %c1_i32 = arith.constant 1 : i32
    %279 = vector.broadcast %c1_i32 : i32 to vector<8x128xi32>
    %280 = arith.cmpi eq, %272, %279 : vector<8x128xi32>
    %281 = vector.shape_cast %264 : vector<8x1xf32> to vector<8x1xf32>
    %282 = vector.broadcast %281 : vector<8x1xf32> to vector<8x128xf32>
    %283 = arith.select %280, %282, %278 : vector<8x128xi1>, vector<8x128xf32>
    %c2_i32 = arith.constant 2 : i32
    %284 = vector.broadcast %c2_i32 : i32 to vector<8x128xi32>
    %285 = arith.cmpi eq, %272, %284 : vector<8x128xi32>
    %286 = arith.sitofp %149 : vector<8x1xi32> to vector<8x1xf32>
    %287 = vector.shape_cast %286 : vector<8x1xf32> to vector<8x1xf32>
    %288 = vector.broadcast %287 : vector<8x1xf32> to vector<8x128xf32>
    %289 = arith.select %285, %288, %283 : vector<8x128xi1>, vector<8x128xf32>
    %c3_i32 = arith.constant 3 : i32
    %290 = vector.broadcast %c3_i32 : i32 to vector<8x128xi32>
    %291 = arith.cmpi eq, %272, %290 : vector<8x128xi32>
    %292 = arith.sitofp %261 : vector<8x1xi32> to vector<8x1xf32>
    %293 = vector.shape_cast %292 : vector<8x1xf32> to vector<8x1xf32>
    %294 = vector.broadcast %293 : vector<8x1xf32> to vector<8x128xf32>
    %295 = arith.select %291, %294, %289 : vector<8x128xi1>, vector<8x128xf32>
    %c4_i32 = arith.constant 4 : i32
    %296 = vector.broadcast %c4_i32 : i32 to vector<8x128xi32>
    %297 = arith.cmpi eq, %272, %296 : vector<8x128xi32>
    %298 = vector.shape_cast %271 : vector<8x1xf32> to vector<8x1xf32>
    %299 = vector.broadcast %298 : vector<8x1xf32> to vector<8x128xf32>
    %300 = arith.select %297, %299, %295 : vector<8x128xi1>, vector<8x128xf32>
    %c0_154 = arith.constant 0 : index
    %c0_155 = arith.constant 0 : index
    %301 = vector.load %arg16[%c0_154, %c0_155] : memref<8x128xf32, #tpu.memory_space<vmem>>, vector<8x128xf32>
    tpu.vector_store %arg16[%c0_154, %c0_155], %300 {strides = array<i32>} : memref<8x128xf32, #tpu.memory_space<vmem>>, vector<8x128xf32>,
    return
  }
  func.func @transform_0(%arg0: i32) -> (i32, i32) {
    %c0_i32 = arith.constant 0 : i32
    %c0_i32_0 = arith.constant 0 : i32
    return %arg0, %c0_i32 : i32, i32
  }
  func.func @transform_1(%arg0: i32) -> (i32, i32) {
    %c0_i32 = arith.constant 0 : i32
    %c0_i32_0 = arith.constant 0 : i32
    return %arg0, %c0_i32 : i32, i32
  }
  func.func @transform_2(%arg0: i32) -> (i32, i32, i32) {
    %c0_i32 = arith.constant 0 : i32
    %c0_i32_0 = arith.constant 0 : i32
    %c0_i32_1 = arith.constant 0 : i32
    return %arg0, %c0_i32, %c0_i32_0 : i32, i32, i32
  }
  func.func @transform_3(%arg0: i32) -> (i32, i32, i32) {
    %c0_i32 = arith.constant 0 : i32
    %c0_i32_0 = arith.constant 0 : i32
    %c0_i32_1 = arith.constant 0 : i32
    return %arg0, %c0_i32, %c0_i32_0 : i32, i32, i32
  }
  func.func @transform_4(%arg0: i32) -> (i32, i32) {
    %c0_i32 = arith.constant 0 : i32
    %c0_i32_0 = arith.constant 0 : i32
    return %arg0, %c0_i32 : i32, i32
  }
  func.func @transform_5(%arg0: i32) -> (i32, i32) {
    %c0_i32 = arith.constant 0 : i32
    %c0_i32_0 = arith.constant 0 : i32
    return %arg0, %c0_i32 : i32, i32
  }
  func.func @transform_6(%arg0: i32) -> (i32, i32) {
    %c0_i32 = arith.constant 0 : i32
    %c0_i32_0 = arith.constant 0 : i32
    %c0_i32_1 = arith.constant 0 : i32
    return %c0_i32, %c0_i32_0 : i32, i32
  }
  func.func @transform_7(%arg0: i32) -> (i32, i32) {
    %c0_i32 = arith.constant 0 : i32
    %c0_i32_0 = arith.constant 0 : i32
    %c0_i32_1 = arith.constant 0 : i32
    return %c0_i32, %c0_i32_0 : i32, i32
  }
  func.func @transform_8(%arg0: i32) -> (i32, i32) {
    %c0_i32 = arith.constant 0 : i32
    %c0_i32_0 = arith.constant 0 : i32
    %c0_i32_1 = arith.constant 0 : i32
    return %c0_i32, %c0_i32_0 : i32, i32
  }
  func.func @transform_9(%arg0: i32) -> (i32, i32) {
    %c0_i32 = arith.constant 0 : i32
    %c0_i32_0 = arith.constant 0 : i32
    %c0_i32_1 = arith.constant 0 : i32
    return %c0_i32, %c0_i32_0 : i32, i32
  }
  func.func @transform_10(%arg0: i32) -> (i32, i32) {
    %c0_i32 = arith.constant 0 : i32
    %c0_i32_0 = arith.constant 0 : i32
    %c0_i32_1 = arith.constant 0 : i32
    return %c0_i32, %c0_i32_0 : i32, i32
  }
  func.func @transform_11(%arg0: i32) -> (i32, i32) {
    %c0_i32 = arith.constant 0 : i32
    %c0_i32_0 = arith.constant 0 : i32
    %c0_i32_1 = arith.constant 0 : i32
    return %c0_i32, %c0_i32_0 : i32, i32
  }
  func.func @transform_12(%arg0: i32) -> (i32, i32) {
    %c0_i32 = arith.constant 0 : i32
    %c0_i32_0 = arith.constant 0 : i32
    %c0_i32_1 = arith.constant 0 : i32
    return %c0_i32, %c0_i32_0 : i32, i32
  }
  func.func @transform_13(%arg0: i32) -> (i32, i32) {
    %c0_i32 = arith.constant 0 : i32
    %c0_i32_0 = arith.constant 0 : i32
    %c0_i32_1 = arith.constant 0 : i32
    return %c0_i32, %c0_i32_0 : i32, i32
  }
  func.func @transform_14(%arg0: i32) -> (i32, i32) {
    %c0_i32 = arith.constant 0 : i32
    %c0_i32_0 = arith.constant 0 : i32
    %c0_i32_1 = arith.constant 0 : i32
    return %c0_i32, %c0_i32_0 : i32, i32
  }
  func.func @transform_15(%arg0: i32) -> (i32, i32) {
    %c0_i32 = arith.constant 0 : i32
    %c0_i32_0 = arith.constant 0 : i32
    return %arg0, %c0_i32 : i32, i32
  }
}

</mosaic_0001>

<bundles_post_ra>
// kernel: tpu_custom_call.1
= control target key start
LH: loop header
LB: loop body
LE: loop exit
PB: predicated region body
PF: predicated region fallthrough
CT: control target
= control target key end

     0   :  { %s1880_s0 = inlined_call_operand.hbm [shape: f32[8,32], index: 0, kind: input, shape index: {}]   ;;  %s1881_s1 = inlined_call_operand.hbm [shape: f32[8,32], index: 1, kind: input, shape index: {}]   ;;  %s1882_s2 = inlined_call_operand.hbm [shape: f32[8,8,32], index: 2, kind: input, shape index: {}]   ;;  %s1883_s3 = inlined_call_operand.hbm [shape: f32[8,8,32], index: 3, kind: input, shape index: {}]   ;;  %s1884_s4 = inlined_call_operand.vmem [shape: f32[8,8], index: 4, kind: input, shape index: {}]   ;;  %s1885_s5 = inlined_call_operand.vmem [shape: f32[8,8], index: 5, kind: input, shape index: {}]   ;;  %s1886_s6 = inlined_call_operand.vmem [shape: bf16[32,32], index: 6, kind: input, shape index: {}]   ;;  %s1887_s7 = inlined_call_operand.vmem [shape: bf16[32,32], index: 7, kind: input, shape index: {}]   ;;  %s1888_s8 = inlined_call_operand.vmem [shape: f32[1,32], index: 8, kind: input, shape index: {}]   ;;  %s1889_s9 = inlined_call_operand.vmem [shape: bf16[32,16], index: 9, kind: input, shape index: {}]   ;;  %s1890_s10 = inlined_call_operand.vmem [shape: f32[1,16], index: 10, kind: input, shape index: {}]   ;;  %s1891_s11 = inlined_call_operand.vmem [shape: bf16[16,8], index: 11, kind: input, shape index: {}]   ;;  %s1892_s12 = inlined_call_operand.vmem [shape: f32[1,8], index: 12, kind: input, shape index: {}]   ;;  %s1893_s13 = inlined_call_operand.vmem [shape: f32[1,8], index: 13, kind: input, shape index: {}]   ;;  %s1894_s14 = inlined_call_operand.<no memory space> [shape: f32[1,1], index: 14, kind: input, shape index: {}]   ;;  %s1895_s15 = inlined_call_operand.hbm [shape: f32[8,128], index: 15, kind: output, shape index: {}]  }
   0x1   :  { %v20_v0 = vstv %s1894_s14 }
   0x2   :  { %21 = vst [vmem:[#allocation2] sm:$0x1] %v20_v0 }
   0x3   :  { %22 = vsyncpa [#allocation4], 0 }
   0x4   :  { %23 = vsyncpa [#allocation7], 0 }
   0x5   :  { %24 = vsyncpa [#allocation10], 0 }
   0x6   :  { %25 = vsyncpa [#allocation5], 0  ;;  %s1405_s20 = smov [#allocation6]   ;;  %s1406_s22 = smov [#allocation3]  }
   0x7   :  { %s42_s21 = sshll.u32 %s1405_s20, 4  ;;  %s32_s23 = sshll.u32 %s1406_s22, 4  ;;  %s43_s21 = int_to_ptr.vmem [resolvable:$true] %s42_s21  ;;  %s33_s23 = int_to_ptr.vmem [resolvable:$true] %s32_s23 }
   0x8   :  { %s1287_s26 = scalar_lea.hbm %s1881_s1, 128 }
   0x9   :  { %p1288_p0 = scmp.ne.s32.totalorder %s1881_s1, %s1287_s26  ;;  %p1291_p1 = scmp.lt.u32.totalorder %s1287_s26, %s1881_s1 }
   0xb   :  { %p1293_p2 = pnand %p1291_p1, %p1288_p0 }
   0xd   :  { %1296 = shalt.err (!%p1293_p2)
}
   0xe   :  { %s1297_s30 = scalar_lea.vmem %s43_s21, 128  ;;  %p1302_p4 = scmp.lt.s32.totalorder %s43_s21, %s43_s21 }
   0xf   :  { %p1298_p3 = scmp.ne.s32.totalorder %s43_s21, %s1297_s30  ;;  %p1303_p5 = scmp.lt.s32.totalorder %s1297_s30, %s1297_s30 }
  0x11   :  { %p1304_p6 = por %p1303_p5, %p1302_p4 }
  0x13   :  { %p1305_p7 = pnand %p1304_p6, %p1298_p3 }
  0x15   :  { %1308 = shalt.err (!%p1305_p7)
}
  0x16   :  { %45 = dma.hbm_to_vmem [thread:$0]  %s1881_s1, 128, %s43_s21, [#allocation7]  }
  0x17   :  { %s1309_s20 = scalar_lea.hbm %s1880_s0, 128 }
  0x18   :  { %p1310_p8 = scmp.ne.s32.totalorder %s1880_s0, %s1309_s20  ;;  %p1313_p9 = scmp.lt.u32.totalorder %s1309_s20, %s1880_s0 }
  0x1a   :  { %p1315_p10 = pnand %p1313_p9, %p1310_p8 }
  0x1c   :  { %1318 = shalt.err (!%p1315_p10)
}
  0x1d   :  { %s1319_s27 = scalar_lea.vmem %s33_s23, 128  ;;  %p1324_p12 = scmp.lt.s32.totalorder %s33_s23, %s33_s23 }
  0x1e   :  { %p1320_p11 = scmp.ne.s32.totalorder %s33_s23, %s1319_s27  ;;  %p1325_p13 = scmp.lt.s32.totalorder %s1319_s27, %s1319_s27 }
  0x20   :  { %p1326_p0 = por %p1325_p13, %p1324_p12 }
  0x22   :  { %p1327_p1 = pnand %p1326_p0, %p1320_p11 }
  0x24   :  { %1330 = shalt.err (!%p1327_p1)
}
  0x25   :  { %35 = dma.hbm_to_vmem [thread:$0]  %s1880_s0, 128, %s33_s23, [#allocation4]  }
  0x26   :  { %s1407_s28 = smov [#allocation8]   ;;  %s1331_s16 = scalar_lea.hbm %s1882_s2, 1024 }
  0x27   :  { %s51_s14 = sshll.u32 %s1407_s28, 4  ;;  %p1332_p2 = scmp.ne.s32.totalorder %s1882_s2, %s1331_s16  ;;  %s52_s14 = int_to_ptr.vmem [resolvable:$true] %s51_s14 }
  0x28   :  { %p1335_p3 = scmp.lt.u32.totalorder %s1331_s16, %s1882_s2 }
  0x2a   :  { %p1337_p4 = pnand %p1335_p3, %p1332_p2 }
  0x2c   :  { %1340 = shalt.err (!%p1337_p4)
}
  0x2d   :  { %s1341_s22 = scalar_lea.vmem %s52_s14, 1024  ;;  %p1346_p6 = scmp.lt.s32.totalorder %s52_s14, %s52_s14 }
  0x2e   :  { %p1342_p5 = scmp.ne.s32.totalorder %s52_s14, %s1341_s22  ;;  %p1347_p7 = scmp.lt.s32.totalorder %s1341_s22, %s1341_s22 }
  0x30   :  { %p1348_p8 = por %p1347_p7, %p1346_p6 }
  0x32   :  { %p1349_p9 = pnand %p1348_p8, %p1342_p5 }
  0x34   :  { %1352 = shalt.err (!%p1349_p9)
}
  0x35   :  { %s1408_s0 = smov 128   ;;  %s1409_s23 = smov 8  }
  0x36   :  { %57 = dma.hbm_to_vmem [thread:$0]  %s1882_s2, 1024, %s52_s14, [#allocation7], %s1408_s0, %s1408_s0, %s1409_s23  }
  0x37   :  { %s1410_s26 = smov [#allocation9]   ;;  %s1353_s28 = scalar_lea.hbm %s1883_s3, 1024 }
  0x38   :  { %s63_s27 = sshll.u32 %s1410_s26, 4  ;;  %p1354_p10 = scmp.ne.s32.totalorder %s1883_s3, %s1353_s28  ;;  %s64_s27 = int_to_ptr.vmem [resolvable:$true] %s63_s27 }
  0x39   :  { %p1357_p11 = scmp.lt.u32.totalorder %s1353_s28, %s1883_s3 }
  0x3b   :  { %p1359_p12 = pnand %p1357_p11, %p1354_p10 }
  0x3d   :  { %1362 = shalt.err (!%p1359_p12)
}
  0x3e   :  { %s1363_s18 = scalar_lea.vmem %s64_s27, 1024  ;;  %p1368_p0 = scmp.lt.s32.totalorder %s64_s27, %s64_s27 }
  0x3f   :  { %p1364_p13 = scmp.ne.s32.totalorder %s64_s27, %s1363_s18  ;;  %p1369_p1 = scmp.lt.s32.totalorder %s1363_s18, %s1363_s18 }
  0x41   :  { %p1370_p2 = por %p1369_p1, %p1368_p0 }
  0x43   :  { %p1371_p3 = pnand %p1370_p2, %p1364_p13 }
  0x45   :  { %1374 = shalt.err (!%p1371_p3)
}
  0x46   :  { %69 = dma.hbm_to_vmem [thread:$0]  %s1883_s3, 1024, %s64_s27, [#allocation10], %s1408_s0, %s1408_s0, %s1409_s23  }
  0x47   :  { %1397 = dma.done.wait [#allocation4], 128  }
  0x48   :  { %1398 = vsyncadd [#allocation4], 4294967168 }
  0x49   :  { %1399 = dma.done.wait [#allocation7], 1152  }
  0x4a   :  { %1400 = vsyncadd [#allocation7], 4294966144 }
  0x4b   :  { %1401 = dma.done.wait [#allocation10], 1024  }
  0x4c   :  { %1402 = vsyncadd [#allocation10], 4294966272  ;;  %v1411_v1 = vmov 0.0   ;;  %vm1412_vm0 = vmmov 0   ;;  %v1270_v2 = vld [vmem:[%s1887_s7] sm:$0xff]   ;;  %vm129_vm1 = vcmask 261120  }
  0x4d   :  { %1211 = vmatprep.subr.bf16.mxu0 %v1411_v1  ;;  %1219 = vmatprep.subr.bf16.mxu1 %v1411_v1  ;;  %v1271_v3 = vld [vmem:[%s1886_s6] sm:$0xff]   ;;  %vm404_vm2 = vcmask 1041409   ;;  %v1272_v4 = vld [vmem:[%s1887_s7 + $0x8] sm:$0xff]   ;;  %vm407_vm3 = vcmask 1042434   ;;  %vm410_vm4 = vcmask 1043459   ;;  %vm413_vm5 = vcmask 1044484  }
  0x4e   :  { %1215 = vmatprep.mubr.msk.bf16.mxu0 %vm1412_vm0, %v1411_v1  ;;  %1223 = vmatprep.mubr.msk.bf16.mxu1 %vm1412_vm0, %v1411_v1  ;;  %v1273_v5 = vld [vmem:[%s1886_s6 + $0x8] sm:$0xff]   ;;  %v387_v8 = vld [vmem:[#allocation8] sm:$0x1]  ;;  %vm416_vm6 = vcmask 1045509   ;;  %v388_v10 = vld [vmem:[#allocation8 + $0x8] sm:$0x1] }
  0x4f   :  { %1212 = vmatpush3.bf16.msra.mxu0 %v1270_v2  ;;  %1220 = vmatpush3.bf16.msra.mxu1 %v1271_v3  ;;  %v1573_v6 = vld [vmem:[#allocation6] sm:$0xff]  ;;  %v1575_v7 = vld [vmem:[#allocation3] sm:$0xff]  ;;  %v391_v14 = vld [vmem:[#allocation8 + $0x20] sm:$0x1]  ;;  %v403_v18 = vrot.slane %v388_v10, 7  ;;  %vm419_vm7 = vcmask 1046534  }
  0x50   :  { %1213 = vmatprep.subr.bf16.mxu0 %v1411_v1  ;;  %1221 = vmatprep.subr.bf16.mxu1 %v1411_v1  ;;  %v112_v9 = vpack.c.bf16 %v1573_v6, %v1573_v6  ;;  %v389_v11 = vld [vmem:[#allocation8 + $0x10] sm:$0x1]  ;;  %v390_v12 = vld [vmem:[#allocation8 + $0x18] sm:$0x1]  ;;  %v107_v13 = vpack.c.bf16 %v1575_v7, %v1575_v7  ;;  %v392_v15 = vld [vmem:[#allocation8 + $0x28] sm:$0x1] }
  0x51   :  { %v393_v16 = vld [vmem:[#allocation8 + $0x30] sm:$0x1]  ;;  %v394_v17 = vld [vmem:[#allocation8 + $0x38] sm:$0x1]  ;;  %v406_v19 = vrot.slane %v389_v11, 6  ;;  %v409_v20 = vrot.slane %v390_v12, 5  ;;  %v405_v26 = vsel %vm404_vm2, %v403_v18, %v387_v8 }
  0x52   :  { %v412_v21 = vrot.slane %v391_v14, 4  ;;  %v415_v22 = vrot.slane %v392_v15, 3  ;;  %v418_v23 = vrot.slane %v393_v16, 2  ;;  %v421_v24 = vrot.slane %v394_v17, 1  ;;  %v770_v25 = vld [vmem:[#allocation9] sm:$0x1] }
  0x53   :  { %1214 = vmatpush3.bf16.msra.mxu0 %v1272_v4  ;;  %1222 = vmatpush3.bf16.msra.mxu1 %v1273_v5  ;;  %v771_v27 = vld [vmem:[#allocation9 + $0x8] sm:$0x1]  ;;  %v772_v28 = vld [vmem:[#allocation9 + $0x10] sm:$0x1]  ;;  %v773_v29 = vld [vmem:[#allocation9 + $0x18] sm:$0x1]  ;;  %v408_v30 = vsel %vm407_vm3, %v406_v19, %v405_v26 }
  0x54   :  { %1227 = vmatprep.subr.bf16.mxu0 %v1411_v1  ;;  %1235 = vmatprep.subr.bf16.mxu1 %v1411_v1  ;;  %v774_v31 = vld [vmem:[#allocation9 + $0x20] sm:$0x1]  ;;  %v775_v32 = vld [vmem:[#allocation9 + $0x28] sm:$0x1]  ;;  %v776_v33 = vld [vmem:[#allocation9 + $0x30] sm:$0x1]  ;;  %v411_v34 = vsel %vm410_vm4, %v409_v20, %v408_v30 }
  0x55   :  { %v777_v35 = vld [vmem:[#allocation9 + $0x38] sm:$0x1]  ;;  %v786_v36 = vrot.slane %v771_v27, 7  ;;  %v788_v37 = vrot.slane %v772_v28, 6  ;;  %v790_v38 = vrot.slane %v773_v29, 5  ;;  %v414_v39 = vsel %vm413_vm5, %v412_v21, %v411_v34 }
  0x56   :  { %1216 = vmatmul.mubr.msk.bf16.vlgmr.msra.gmra.mrb[0].mxu0 %vm129_vm1, %v112_v9  ;;  %1224 = vmatmul.mubr.msk.bf16.vlgmr.msra.gmra.mrb[0].mxu1 %vm129_vm1, %v107_v13  ;;  %vm422_vm8 = vcmask 1047559   ;;  %v792_v40 = vrot.slane %v774_v31, 4  ;;  %v794_v41 = vrot.slane %v775_v32, 3  ;;  %v429_v42 = vld [vmem:[#allocation8 + $0x1] sm:$0x1]  ;;  %v417_v43 = vsel %vm416_vm6, %v415_v22, %v414_v39 }
  0x57   :  { %1231 = vmatprep.mubr.msk.bf16.mxu0 %vm1412_vm0, %v1411_v1  ;;  %1237 = vmatprep.mubr.msk.bf16.mxu1 %vm1412_vm0, %v1411_v1  ;;  %v787_v44 = vsel %vm404_vm2, %v786_v36, %v770_v25  ;;  %v796_v45 = vrot.slane %v776_v33, 2  ;;  %v798_v46 = vrot.slane %v777_v35, 1  ;;  %v430_v47 = vld [vmem:[#allocation8 + $0x9] sm:$0x1]  ;;  %v431_v48 = vld [vmem:[#allocation8 + $0x11] sm:$0x1]  ;;  %v420_v49 = vsel %vm419_vm7, %v418_v23, %v417_v43 }
  0x58   :  { %v789_v50 = vsel %vm407_vm3, %v788_v37, %v787_v44  ;;  %v432_v51 = vld [vmem:[#allocation8 + $0x19] sm:$0x1]  ;;  %v433_v52 = vld [vmem:[#allocation8 + $0x21] sm:$0x1]  ;;  %v434_v53 = vld [vmem:[#allocation8 + $0x29] sm:$0x1]  ;;  %v1598_v54 = vsel %vm422_vm8, %v421_v24, %v420_v49 }
  0x59   :  { %v791_v55 = vsel %vm410_vm4, %v790_v38, %v789_v50  ;;  %v435_v56 = vld [vmem:[#allocation8 + $0x31] sm:$0x1]  ;;  %v436_v57 = vld [vmem:[#allocation8 + $0x39] sm:$0x1]  ;;  %v445_v58 = vrot.slane %v430_v47, 7  ;;  %v447_v59 = vrot.slane %v431_v48, 6  ;;  %v425_v60 = vmul.f32 %v1598_v54, %v1573_v6 }
  0x5a   :  { %v793_v61 = vsel %vm413_vm5, %v792_v40, %v791_v55  ;;  %v449_v62 = vrot.slane %v432_v51, 5  ;;  %v451_v63 = vrot.slane %v433_v52, 4  ;;  %v805_v0 = vld [vmem:[#allocation9 + $0x1] sm:$0x1]  ;;  %v806_v2 = vld [vmem:[#allocation9 + $0x9] sm:$0x1] }
  0x5b   :  { %v795_v3 = vsel %vm416_vm6, %v794_v41, %v793_v61  ;;  %v446_v4 = vsel %vm404_vm2, %v445_v58, %v429_v42  ;;  %v453_v5 = vrot.slane %v434_v53, 3  ;;  %v455_v8 = vrot.slane %v435_v56, 2  ;;  %v807_v9 = vld [vmem:[#allocation9 + $0x11] sm:$0x1]  ;;  %v808_v10 = vld [vmem:[#allocation9 + $0x19] sm:$0x1] }
  0x5c   :  { %v426_v11 = vsel %vm129_vm1, %v425_v60, 0.0  ;;  %v797_v12 = vsel %vm419_vm7, %v796_v45, %v795_v3  ;;  %v448_v13 = vsel %vm407_vm3, %v447_v59, %v446_v4  ;;  %v457_v14 = vrot.slane %v436_v57, 1  ;;  %v809_v15 = vld [vmem:[#allocation9 + $0x21] sm:$0x1]  ;;  %v810_v16 = vld [vmem:[#allocation9 + $0x29] sm:$0x1] }
  0x5d   :  { %427 = vadd.xlane.f32.xlu0 %v426_v11  ;;  %v1610_v17 = vsel %vm422_vm8, %v798_v46, %v797_v12  ;;  %v450_v18 = vsel %vm410_vm4, %v449_v62, %v448_v13  ;;  %v811_v19 = vld [vmem:[#allocation9 + $0x31] sm:$0x1]  ;;  %v812_v20 = vld [vmem:[#allocation9 + $0x39] sm:$0x1]  ;;  %v821_v21 = vrot.slane %v806_v2, 7  ;;  %v823_v22 = vrot.slane %v807_v9, 6 }
  0x5e   :  { %v801_v23 = vmul.f32 %v1610_v17, %v1575_v7  ;;  %v452_v24 = vsel %vm413_vm5, %v451_v63, %v450_v18  ;;  %v825_v25 = vrot.slane %v808_v10, 5  ;;  %v827_v26 = vrot.slane %v809_v15, 4  ;;  %v464_v27 = vld [vmem:[#allocation8 + $0x2] sm:$0x1]  ;;  %v465_v28 = vld [vmem:[#allocation8 + $0xa] sm:$0x1] }
  0x5f   :  { %v454_v29 = vsel %vm416_vm6, %v453_v5, %v452_v24  ;;  %v822_v30 = vsel %vm404_vm2, %v821_v21, %v805_v0  ;;  %v829_v31 = vrot.slane %v810_v16, 3  ;;  %v831_v32 = vrot.slane %v811_v19, 2  ;;  %v466_v33 = vld [vmem:[#allocation8 + $0x12] sm:$0x1]  ;;  %v467_v34 = vld [vmem:[#allocation8 + $0x1a] sm:$0x1] }
  0x60   :  { %v802_v35 = vsel %vm129_vm1, %v801_v23, 0.0  ;;  %v456_v36 = vsel %vm419_vm7, %v455_v8, %v454_v29  ;;  %v824_v37 = vsel %vm407_vm3, %v823_v22, %v822_v30  ;;  %v833_v38 = vrot.slane %v812_v20, 1  ;;  %v468_v39 = vld [vmem:[#allocation8 + $0x22] sm:$0x1]  ;;  %v469_v40 = vld [vmem:[#allocation8 + $0x2a] sm:$0x1] }
  0x61   :  { %803 = vadd.xlane.f32.xlu1 %v802_v35  ;;  %v1622_v41 = vsel %vm422_vm8, %v457_v14, %v456_v36  ;;  %v826_v42 = vsel %vm410_vm4, %v825_v25, %v824_v37  ;;  %v470_v43 = vld [vmem:[#allocation8 + $0x32] sm:$0x1]  ;;  %v471_v44 = vld [vmem:[#allocation8 + $0x3a] sm:$0x1]  ;;  %v480_v45 = vrot.slane %v465_v28, 7  ;;  %v482_v46 = vrot.slane %v466_v33, 6 }
  0x62   :  { %v460_v47 = vmul.f32 %v1622_v41, %v1573_v6  ;;  %v828_v48 = vsel %vm413_vm5, %v827_v26, %v826_v42  ;;  %v484_v49 = vrot.slane %v467_v34, 5  ;;  %v486_v50 = vrot.slane %v468_v39, 4  ;;  %v840_v51 = vld [vmem:[#allocation9 + $0x2] sm:$0x1]  ;;  %v841_v52 = vld [vmem:[#allocation9 + $0xa] sm:$0x1] }
  0x63   :  { %v830_v53 = vsel %vm416_vm6, %v829_v31, %v828_v48  ;;  %v481_v55 = vsel %vm404_vm2, %v480_v45, %v464_v27  ;;  %v488_v56 = vrot.slane %v469_v40, 3  ;;  %v490_v57 = vrot.slane %v470_v43, 2  ;;  %v842_v58 = vld [vmem:[#allocation9 + $0x12] sm:$0x1]  ;;  %v843_v59 = vld [vmem:[#allocation9 + $0x1a] sm:$0x1] }
  0x64   :  { %v461_v60 = vsel %vm129_vm1, %v460_v47, 0.0  ;;  %v832_v61 = vsel %vm419_vm7, %v831_v32, %v830_v53  ;;  %v483_v62 = vsel %vm407_vm3, %v482_v46, %v481_v55  ;;  %v492_v63 = vrot.slane %v471_v44, 1  ;;  %v844_v0 = vld [vmem:[#allocation9 + $0x22] sm:$0x1]  ;;  %v845_v2 = vld [vmem:[#allocation9 + $0x2a] sm:$0x1] }
  0x65   :  { %462 = vadd.xlane.f32.xlu0 %v461_v60  ;;  %v1634_v3 = vsel %vm422_vm8, %v833_v38, %v832_v61  ;;  %v485_v4 = vsel %vm410_vm4, %v484_v49, %v483_v62  ;;  %v846_v5 = vld [vmem:[#allocation9 + $0x32] sm:$0x1]  ;;  %v847_v8 = vld [vmem:[#allocation9 + $0x3a] sm:$0x1]  ;;  %v856_v9 = vrot.slane %v841_v52, 7  ;;  %v858_v10 = vrot.slane %v842_v58, 6 }
  0x66   :  { %v836_v11 = vmul.f32 %v1634_v3, %v1575_v7  ;;  %v487_v12 = vsel %vm413_vm5, %v486_v50, %v485_v4  ;;  %v860_v13 = vrot.slane %v843_v59, 5  ;;  %v862_v14 = vrot.slane %v844_v0, 4  ;;  %v499_v15 = vld [vmem:[#allocation8 + $0x3] sm:$0x1]  ;;  %v500_v16 = vld [vmem:[#allocation8 + $0xb] sm:$0x1] }
  0x67   :  { %v489_v18 = vsel %vm416_vm6, %v488_v56, %v487_v12  ;;  %v857_v19 = vsel %vm404_vm2, %v856_v9, %v840_v51  ;;  %v864_v20 = vrot.slane %v845_v2, 3  ;;  %v866_v21 = vrot.slane %v846_v5, 2  ;;  %v501_v22 = vld [vmem:[#allocation8 + $0x13] sm:$0x1]  ;;  %v502_v23 = vld [vmem:[#allocation8 + $0x1b] sm:$0x1] }
  0x68   :  { %v837_v24 = vsel %vm129_vm1, %v836_v11, 0.0  ;;  %v491_v25 = vsel %vm419_vm7, %v490_v57, %v489_v18  ;;  %v859_v26 = vsel %vm407_vm3, %v858_v10, %v857_v19  ;;  %v868_v27 = vrot.slane %v847_v8, 1  ;;  %v503_v28 = vld [vmem:[#allocation8 + $0x23] sm:$0x1]  ;;  %v504_v29 = vld [vmem:[#allocation8 + $0x2b] sm:$0x1] }
  0x69   :  { %838 = vadd.xlane.f32.xlu1 %v837_v24  ;;  %v1646_v30 = vsel %vm422_vm8, %v492_v63, %v491_v25  ;;  %v861_v31 = vsel %vm410_vm4, %v860_v13, %v859_v26  ;;  %v505_v32 = vld [vmem:[#allocation8 + $0x33] sm:$0x1]  ;;  %v506_v33 = vld [vmem:[#allocation8 + $0x3b] sm:$0x1]  ;;  %v515_v34 = vrot.slane %v500_v16, 7  ;;  %v517_v35 = vrot.slane %v501_v22, 6 }
  0x6a   :  { %v495_v36 = vmul.f32 %v1646_v30, %v1573_v6  ;;  %v863_v37 = vsel %vm413_vm5, %v862_v14, %v861_v31  ;;  %v519_v38 = vrot.slane %v502_v23, 5  ;;  %v521_v39 = vrot.slane %v503_v28, 4  ;;  %v875_v40 = vld [vmem:[#allocation9 + $0x3] sm:$0x1]  ;;  %v876_v42 = vld [vmem:[#allocation9 + $0xb] sm:$0x1] }
  0x6b   :  { %v865_v43 = vsel %vm416_vm6, %v864_v20, %v863_v37  ;;  %v516_v44 = vsel %vm404_vm2, %v515_v34, %v499_v15  ;;  %v523_v45 = vrot.slane %v504_v29, 3  ;;  %v525_v46 = vrot.slane %v505_v32, 2  ;;  %v877_v47 = vld [vmem:[#allocation9 + $0x13] sm:$0x1]  ;;  %v878_v48 = vld [vmem:[#allocation9 + $0x1b] sm:$0x1] }
  0x6c   :  { %v496_v49 = vsel %vm129_vm1, %v495_v36, 0.0  ;;  %v867_v50 = vsel %vm419_vm7, %v866_v21, %v865_v43  ;;  %v518_v51 = vsel %vm407_vm3, %v517_v35, %v516_v44  ;;  %v527_v52 = vrot.slane %v506_v33, 1  ;;  %v879_v53 = vld [vmem:[#allocation9 + $0x23] sm:$0x1]  ;;  %v880_v55 = vld [vmem:[#allocation9 + $0x2b] sm:$0x1] }
  0x6d   :  { %497 = vadd.xlane.f32.xlu0 %v496_v49  ;;  %v1658_v56 = vsel %vm422_vm8, %v868_v27, %v867_v50  ;;  %v520_v57 = vsel %vm410_vm4, %v519_v38, %v518_v51  ;;  %v881_v58 = vld [vmem:[#allocation9 + $0x33] sm:$0x1]  ;;  %v882_v59 = vld [vmem:[#allocation9 + $0x3b] sm:$0x1]  ;;  %v891_v60 = vrot.slane %v876_v42, 7  ;;  %v893_v61 = vrot.slane %v877_v47, 6 }
  0x6e   :  { %v871_v62 = vmul.f32 %v1658_v56, %v1575_v7  ;;  %v522_v63 = vsel %vm413_vm5, %v521_v39, %v520_v57  ;;  %v895_v0 = vrot.slane %v878_v48, 5  ;;  %v897_v2 = vrot.slane %v879_v53, 4  ;;  %v534_v4 = vld [vmem:[#allocation8 + $0x4] sm:$0x1]  ;;  %v535_v5 = vld [vmem:[#allocation8 + $0xc] sm:$0x1] }
  0x6f   :  { %v524_v8 = vsel %vm416_vm6, %v523_v45, %v522_v63  ;;  %v892_v9 = vsel %vm404_vm2, %v891_v60, %v875_v40  ;;  %v899_v10 = vrot.slane %v880_v55, 3  ;;  %v901_v11 = vrot.slane %v881_v58, 2  ;;  %v536_v12 = vld [vmem:[#allocation8 + $0x14] sm:$0x1]  ;;  %v537_v13 = vld [vmem:[#allocation8 + $0x1c] sm:$0x1] }
  0x70   :  { %v872_v14 = vsel %vm129_vm1, %v871_v62, 0.0  ;;  %v526_v15 = vsel %vm419_vm7, %v525_v46, %v524_v8  ;;  %v894_v16 = vsel %vm407_vm3, %v893_v61, %v892_v9  ;;  %v903_v18 = vrot.slane %v882_v59, 1  ;;  %v538_v19 = vld [vmem:[#allocation8 + $0x24] sm:$0x1]  ;;  %v539_v20 = vld [vmem:[#allocation8 + $0x2c] sm:$0x1] }
  0x71   :  { %873 = vadd.xlane.f32.xlu1 %v872_v14  ;;  %v1670_v21 = vsel %vm422_vm8, %v527_v52, %v526_v15  ;;  %v896_v22 = vsel %vm410_vm4, %v895_v0, %v894_v16  ;;  %v540_v23 = vld [vmem:[#allocation8 + $0x34] sm:$0x1]  ;;  %v541_v24 = vld [vmem:[#allocation8 + $0x3c] sm:$0x1]  ;;  %v550_v25 = vrot.slane %v535_v5, 7  ;;  %v552_v26 = vrot.slane %v536_v12, 6 }
  0x72   :  { %v530_v27 = vmul.f32 %v1670_v21, %v1573_v6  ;;  %v898_v28 = vsel %vm413_vm5, %v897_v2, %v896_v22  ;;  %v554_v29 = vrot.slane %v537_v13, 5  ;;  %v556_v31 = vrot.slane %v538_v19, 4  ;;  %v910_v32 = vld [vmem:[#allocation9 + $0x4] sm:$0x1]  ;;  %v911_v33 = vld [vmem:[#allocation9 + $0xc] sm:$0x1] }
  0x73   :  { %v900_v34 = vsel %vm416_vm6, %v899_v10, %v898_v28  ;;  %v551_v35 = vsel %vm404_vm2, %v550_v25, %v534_v4  ;;  %v558_v36 = vrot.slane %v539_v20, 3  ;;  %v560_v37 = vrot.slane %v540_v23, 2  ;;  %v912_v38 = vld [vmem:[#allocation9 + $0x14] sm:$0x1]  ;;  %v913_v39 = vld [vmem:[#allocation9 + $0x1c] sm:$0x1] }
  0x74   :  { %v531_v40 = vsel %vm129_vm1, %v530_v27, 0.0  ;;  %v902_v42 = vsel %vm419_vm7, %v901_v11, %v900_v34  ;;  %v553_v43 = vsel %vm407_vm3, %v552_v26, %v551_v35  ;;  %v562_v44 = vrot.slane %v541_v24, 1  ;;  %v914_v45 = vld [vmem:[#allocation9 + $0x24] sm:$0x1]  ;;  %v915_v46 = vld [vmem:[#allocation9 + $0x2c] sm:$0x1] }
  0x75   :  { %532 = vadd.xlane.f32.xlu0 %v531_v40  ;;  %v1682_v47 = vsel %vm422_vm8, %v903_v18, %v902_v42  ;;  %v555_v48 = vsel %vm410_vm4, %v554_v29, %v553_v43  ;;  %v916_v49 = vld [vmem:[#allocation9 + $0x34] sm:$0x1]  ;;  %v917_v50 = vld [vmem:[#allocation9 + $0x3c] sm:$0x1]  ;;  %v926_v51 = vrot.slane %v911_v33, 7  ;;  %v928_v52 = vrot.slane %v912_v38, 6 }
  0x76   :  { %v906_v53 = vmul.f32 %v1682_v47, %v1575_v7  ;;  %v557_v55 = vsel %vm413_vm5, %v556_v31, %v555_v48  ;;  %v930_v57 = vrot.slane %v913_v39, 5  ;;  %v932_v58 = vrot.slane %v914_v45, 4  ;;  %v569_v59 = vld [vmem:[#allocation8 + $0x5] sm:$0x1]  ;;  %v570_v60 = vld [vmem:[#allocation8 + $0xd] sm:$0x1] }
  0x77   :  { %v559_v61 = vsel %vm416_vm6, %v558_v36, %v557_v55  ;;  %v927_v62 = vsel %vm404_vm2, %v926_v51, %v910_v32  ;;  %v934_v63 = vrot.slane %v915_v46, 3  ;;  %v936_v0 = vrot.slane %v916_v49, 2  ;;  %v571_v2 = vld [vmem:[#allocation8 + $0x15] sm:$0x1]  ;;  %v572_v4 = vld [vmem:[#allocation8 + $0x1d] sm:$0x1] }
  0x78   :  { %v907_v5 = vsel %vm129_vm1, %v906_v53, 0.0  ;;  %v561_v8 = vsel %vm419_vm7, %v560_v37, %v559_v61  ;;  %v929_v9 = vsel %vm407_vm3, %v928_v52, %v927_v62  ;;  %v938_v10 = vrot.slane %v917_v50, 1  ;;  %v573_v11 = vld [vmem:[#allocation8 + $0x25] sm:$0x1]  ;;  %v574_v12 = vld [vmem:[#allocation8 + $0x2d] sm:$0x1] }
  0x79   :  { %908 = vadd.xlane.f32.xlu1 %v907_v5  ;;  %v1694_v13 = vsel %vm422_vm8, %v562_v44, %v561_v8  ;;  %v931_v14 = vsel %vm410_vm4, %v930_v57, %v929_v9  ;;  %v575_v15 = vld [vmem:[#allocation8 + $0x35] sm:$0x1]  ;;  %v576_v16 = vld [vmem:[#allocation8 + $0x3d] sm:$0x1]  ;;  %v585_v18 = vrot.slane %v570_v60, 7  ;;  %v587_v19 = vrot.slane %v571_v2, 6 }
  0x7a   :  { %v565_v20 = vmul.f32 %v1694_v13, %v1573_v6  ;;  %v933_v22 = vsel %vm413_vm5, %v932_v58, %v931_v14  ;;  %v589_v23 = vrot.slane %v572_v4, 5  ;;  %v591_v24 = vrot.slane %v573_v11, 4  ;;  %v945_v25 = vld [vmem:[#allocation9 + $0x5] sm:$0x1]  ;;  %v946_v26 = vld [vmem:[#allocation9 + $0xd] sm:$0x1] }
  0x7b   :  { %v935_v27 = vsel %vm416_vm6, %v934_v63, %v933_v22  ;;  %v586_v28 = vsel %vm404_vm2, %v585_v18, %v569_v59  ;;  %v593_v29 = vrot.slane %v574_v12, 3  ;;  %v595_v31 = vrot.slane %v575_v15, 2  ;;  %v947_v32 = vld [vmem:[#allocation9 + $0x15] sm:$0x1]  ;;  %v948_v33 = vld [vmem:[#allocation9 + $0x1d] sm:$0x1] }
  0x7c   :  { %v566_v34 = vsel %vm129_vm1, %v565_v20, 0.0  ;;  %v937_v35 = vsel %vm419_vm7, %v936_v0, %v935_v27  ;;  %v588_v36 = vsel %vm407_vm3, %v587_v19, %v586_v28  ;;  %v597_v37 = vrot.slane %v576_v16, 1  ;;  %v949_v38 = vld [vmem:[#allocation9 + $0x25] sm:$0x1]  ;;  %v950_v39 = vld [vmem:[#allocation9 + $0x2d] sm:$0x1] }
  0x7d   :  { %567 = vadd.xlane.f32.xlu0 %v566_v34  ;;  %v1706_v40 = vsel %vm422_vm8, %v938_v10, %v937_v35  ;;  %v590_v42 = vsel %vm410_vm4, %v589_v23, %v588_v36  ;;  %v951_v43 = vld [vmem:[#allocation9 + $0x35] sm:$0x1]  ;;  %v952_v44 = vld [vmem:[#allocation9 + $0x3d] sm:$0x1]  ;;  %v961_v45 = vrot.slane %v946_v26, 7  ;;  %v963_v46 = vrot.slane %v947_v32, 6 }
  0x7e   :  { %v941_v48 = vmul.f32 %v1706_v40, %v1575_v7  ;;  %v592_v49 = vsel %vm413_vm5, %v591_v24, %v590_v42  ;;  %v965_v50 = vrot.slane %v948_v33, 5  ;;  %v967_v51 = vrot.slane %v949_v38, 4  ;;  %v604_v52 = vld [vmem:[#allocation8 + $0x6] sm:$0x1]  ;;  %v605_v53 = vld [vmem:[#allocation8 + $0xe] sm:$0x1] }
  0x7f   :  { %v594_v55 = vsel %vm416_vm6, %v593_v29, %v592_v49  ;;  %v962_v57 = vsel %vm404_vm2, %v961_v45, %v945_v25  ;;  %v969_v58 = vrot.slane %v950_v39, 3  ;;  %v971_v59 = vrot.slane %v951_v43, 2  ;;  %v606_v60 = vld [vmem:[#allocation8 + $0x16] sm:$0x1]  ;;  %v607_v61 = vld [vmem:[#allocation8 + $0x1e] sm:$0x1] }
  0x80   :  { %v942_v62 = vsel %vm129_vm1, %v941_v48, 0.0  ;;  %v596_v63 = vsel %vm419_vm7, %v595_v31, %v594_v55  ;;  %v964_v0 = vsel %vm407_vm3, %v963_v46, %v962_v57  ;;  %v973_v2 = vrot.slane %v952_v44, 1  ;;  %v608_v4 = vld [vmem:[#allocation8 + $0x26] sm:$0x1]  ;;  %v609_v5 = vld [vmem:[#allocation8 + $0x2e] sm:$0x1] }
  0x81   :  { %943 = vadd.xlane.f32.xlu1 %v942_v62  ;;  %v1718_v8 = vsel %vm422_vm8, %v597_v37, %v596_v63  ;;  %v966_v9 = vsel %vm410_vm4, %v965_v50, %v964_v0  ;;  %v610_v10 = vld [vmem:[#allocation8 + $0x36] sm:$0x1]  ;;  %v611_v11 = vld [vmem:[#allocation8 + $0x3e] sm:$0x1]  ;;  %v620_v12 = vrot.slane %v605_v53, 7  ;;  %v622_v14 = vrot.slane %v606_v60, 6 }
  0x82   :  { %v600_v15 = vmul.f32 %v1718_v8, %v1573_v6  ;;  %v968_v16 = vsel %vm413_vm5, %v967_v51, %v966_v9  ;;  %v624_v18 = vrot.slane %v607_v61, 5  ;;  %v626_v19 = vrot.slane %v608_v4, 4  ;;  %v980_v20 = vld [vmem:[#allocation9 + $0x6] sm:$0x1]  ;;  %v981_v22 = vld [vmem:[#allocation9 + $0xe] sm:$0x1] }
  0x83   :  { %v970_v23 = vsel %vm416_vm6, %v969_v58, %v968_v16  ;;  %v621_v24 = vsel %vm404_vm2, %v620_v12, %v604_v52  ;;  %v628_v25 = vrot.slane %v609_v5, 3  ;;  %v630_v26 = vrot.slane %v610_v10, 2  ;;  %v982_v27 = vld [vmem:[#allocation9 + $0x16] sm:$0x1]  ;;  %v983_v28 = vld [vmem:[#allocation9 + $0x1e] sm:$0x1] }
  0x84   :  { %v601_v29 = vsel %vm129_vm1, %v600_v15, 0.0  ;;  %v972_v31 = vsel %vm419_vm7, %v971_v59, %v970_v23  ;;  %v623_v32 = vsel %vm407_vm3, %v622_v14, %v621_v24  ;;  %v632_v33 = vrot.slane %v611_v11, 1  ;;  %v984_v34 = vld [vmem:[#allocation9 + $0x26] sm:$0x1]  ;;  %v985_v35 = vld [vmem:[#allocation9 + $0x2e] sm:$0x1] }
  0x85   :  { %602 = vadd.xlane.f32.xlu0 %v601_v29  ;;  %v1730_v36 = vsel %vm422_vm8, %v973_v2, %v972_v31  ;;  %v625_v37 = vsel %vm410_vm4, %v624_v18, %v623_v32  ;;  %v986_v38 = vld [vmem:[#allocation9 + $0x36] sm:$0x1]  ;;  %v987_v39 = vld [vmem:[#allocation9 + $0x3e] sm:$0x1]  ;;  %v996_v42 = vrot.slane %v981_v22, 7  ;;  %v998_v43 = vrot.slane %v982_v27, 6 }
  0x86   :  { %v976_v44 = vmul.f32 %v1730_v36, %v1575_v7  ;;  %v627_v45 = vsel %vm413_vm5, %v626_v19, %v625_v37  ;;  %v1000_v46 = vrot.slane %v983_v28, 5  ;;  %v1002_v48 = vrot.slane %v984_v34, 4  ;;  %v639_v49 = vld [vmem:[#allocation8 + $0x7] sm:$0x1]  ;;  %v640_v50 = vld [vmem:[#allocation8 + $0xf] sm:$0x1] }
  0x87   :  { %v629_v51 = vsel %vm416_vm6, %v628_v25, %v627_v45  ;;  %v997_v52 = vsel %vm404_vm2, %v996_v42, %v980_v20  ;;  %v1004_v53 = vrot.slane %v985_v35, 3  ;;  %v1006_v55 = vrot.slane %v986_v38, 2  ;;  %v641_v57 = vld [vmem:[#allocation8 + $0x17] sm:$0x1]  ;;  %v642_v58 = vld [vmem:[#allocation8 + $0x1f] sm:$0x1] }
  0x88   :  { %v977_v59 = vsel %vm129_vm1, %v976_v44, 0.0  ;;  %v631_v60 = vsel %vm419_vm7, %v630_v26, %v629_v51  ;;  %v999_v61 = vsel %vm407_vm3, %v998_v43, %v997_v52  ;;  %v1008_v62 = vrot.slane %v987_v39, 1  ;;  %v643_v63 = vld [vmem:[#allocation8 + $0x27] sm:$0x1]  ;;  %v644_v0 = vld [vmem:[#allocation8 + $0x2f] sm:$0x1] }
  0x89   :  { %978 = vadd.xlane.f32.xlu1 %v977_v59  ;;  %v1742_v2 = vsel %vm422_vm8, %v632_v33, %v631_v60  ;;  %v1001_v4 = vsel %vm410_vm4, %v1000_v46, %v999_v61  ;;  %v645_v5 = vld [vmem:[#allocation8 + $0x37] sm:$0x1]  ;;  %v646_v9 = vld [vmem:[#allocation8 + $0x3f] sm:$0x1]  ;;  %v655_v10 = vrot.slane %v640_v50, 7  ;;  %v657_v11 = vrot.slane %v641_v57, 6 }
  0x8a   :  { %v635_v12 = vmul.f32 %v1742_v2, %v1573_v6  ;;  %v1003_v14 = vsel %vm413_vm5, %v1002_v48, %v1001_v4  ;;  %v659_v15 = vrot.slane %v642_v58, 5  ;;  %v661_v16 = vrot.slane %v643_v63, 4  ;;  %v1015_v18 = vld [vmem:[#allocation9 + $0x7] sm:$0x1]  ;;  %v1016_v19 = vld [vmem:[#allocation9 + $0xf] sm:$0x1] }
  0x8b   :  { %v1005_v20 = vsel %vm416_vm6, %v1004_v53, %v1003_v14  ;;  %v656_v22 = vsel %vm404_vm2, %v655_v10, %v639_v49  ;;  %v663_v23 = vrot.slane %v644_v0, 3  ;;  %v665_v24 = vrot.slane %v645_v5, 2  ;;  %v1017_v25 = vld [vmem:[#allocation9 + $0x17] sm:$0x1]  ;;  %v1018_v26 = vld [vmem:[#allocation9 + $0x1f] sm:$0x1] }
  0x8c   :  { %v636_v27 = vsel %vm129_vm1, %v635_v12, 0.0  ;;  %v1007_v28 = vsel %vm419_vm7, %v1006_v55, %v1005_v20  ;;  %v658_v29 = vsel %vm407_vm3, %v657_v11, %v656_v22  ;;  %v667_v31 = vrot.slane %v646_v9, 1  ;;  %v1019_v32 = vld [vmem:[#allocation9 + $0x27] sm:$0x1]  ;;  %v1020_v33 = vld [vmem:[#allocation9 + $0x2f] sm:$0x1] }
  0x8d   :  { %637 = vadd.xlane.f32.xlu0 %v636_v27  ;;  %v1754_v34 = vsel %vm422_vm8, %v1008_v62, %v1007_v28  ;;  %v660_v35 = vsel %vm410_vm4, %v659_v15, %v658_v29  ;;  %v1021_v37 = vld [vmem:[#allocation9 + $0x37] sm:$0x1]  ;;  %v1022_v38 = vld [vmem:[#allocation9 + $0x3f] sm:$0x1]  ;;  %v1031_v39 = vrot.slane %v1016_v19, 7  ;;  %v1033_v42 = vrot.slane %v1017_v25, 6 }
  0x8e   :  { %v1011_v43 = vmul.f32 %v1754_v34, %v1575_v7  ;;  %v662_v44 = vsel %vm413_vm5, %v661_v16, %v660_v35  ;;  %v1035_v45 = vrot.slane %v1018_v26, 5  ;;  %v1037_v46 = vrot.slane %v1019_v32, 4  ;;  %v1275_v10 = vld [vmem:[%s1889_s9 + $0x8] sm:$0xff]  }
  0x8f   :  { %v664_v48 = vsel %vm416_vm6, %v663_v23, %v662_v44  ;;  %v1032_v49 = vsel %vm404_vm2, %v1031_v39, %v1015_v18  ;;  %v1039_v50 = vrot.slane %v1020_v33, 3  ;;  %v1041_v55 = vrot.slane %v1021_v37, 2  ;;  %v386_v39 = vld [vmem:[%s1884_s4] sm:$0xff] }
  0x90   :  { %v1012_v51 = vsel %vm129_vm1, %v1011_v43, 0.0  ;;  %v666_v52 = vsel %vm419_vm7, %v665_v24, %v664_v48  ;;  %v1034_v53 = vsel %vm407_vm3, %v1033_v42, %v1032_v49  ;;  %v1043_v59 = vrot.slane %v1022_v38, 1  ;;  %v769_v48 = vld [vmem:[%s1885_s5] sm:$0xff] }
  0x91   :  { %1013 = vadd.xlane.f32.xlu1 %v1012_v51  ;;  %v1766_v57 = vsel %vm422_vm8, %v667_v31, %v666_v52  ;;  %v1036_v58 = vsel %vm410_vm4, %v1035_v45, %v1034_v53  ;;  %vm674_vm9 = vcmask 7168   ;;  %vm676_vm10 = vcmask 15360  }
  0x92   :  { %v670_v60 = vmul.f32 %v1766_v57, %v1573_v6  ;;  %v1038_v61 = vsel %vm413_vm5, %v1037_v46, %v1036_v58  ;;  %v1274_v6 = vld [vmem:[%s1889_s9] sm:$0xff]   ;;  %vm678_vm11 = vcmask 23552   ;;  %vm680_vm12 = vcmask 31744  }
  0x93   :  { %v1040_v62 = vsel %vm416_vm6, %v1039_v50, %v1038_v61  ;;  %1228 = vmatpush3.bf16.msra.mxu0 %v1274_v6  ;;  %vm682_vm13 = vcmask 39936   ;;  %vm684_vm14 = vcmask 48128   ;;  %vm686_vm15 = vcmask 56320   ;;  %v1190_v58 = vld [vmem:[%s1888_s8] ss:$0 sm:$0xff] }
  0x94   :  { %v671_v63 = vsel %vm129_vm1, %v670_v60, 0.0  ;;  %v1042_v0 = vsel %vm419_vm7, %v1041_v55, %v1040_v62  ;;  %1229 = vmatprep.subr.bf16.mxu0 %v1411_v1  ;;  %vm689_vm0 = vcmp.gt.f32.partialorder %v386_v39, 0.5  ;;  %vm374_vm2 = vcmask 64512  }
  0x95   :  { %672 = vadd.xlane.f32.xlu0 %v671_v63  ;;  %v1776_v4 = vsel %vm422_vm8, %v1043_v59, %v1042_v0  ;;  %vm1058_vm3 = vcmp.gt.f32.partialorder %v769_v48, 0.5  ;;  %v1413_v39 = vmov 1   ;;  %vm321_vm6 = vcmask 130048  }
  0x96   :  { %v1046_v5 = vmul.f32 %v1776_v4, %v1575_v7  ;;  %1259 = vset.pattern.permute.xlu0 %v1413_v39 }
  0x97   :  { %1230 = vmatpush3.bf16.msra.mxu0 %v1275_v10 }
  0x98   :  { %v1047_v9 = vsel %vm129_vm1, %v1046_v5, 0.0 }
  0x99   :  { %1048 = vadd.xlane.f32.xlu1 %v1047_v9 }
  0xea   :  { %v428_v11 = vpop.xlane.xlu0 %427 }
  0xee   :  { %v804_v12 = vpop.xlane.xlu1 %803 }
  0xf2   :  { %v463_v14 = vpop.xlane.xlu0 %462 }
  0xf3   :  { %v675_v22 = vsel %vm674_vm9, %v428_v11, %v463_v14 }
  0xf6   :  { %v839_v15 = vpop.xlane.xlu1 %838 }
  0xf7   :  { %v1050_v25 = vsel %vm674_vm9, %v804_v12, %v839_v15  ;;  %v1276_v15 = vld [vmem:[%s1891_s11] sm:$0xff]  }
  0xf8   :  { %1236 = vmatpush3.bf16.msra.mxu1 %v1276_v15 }
  0xfa   :  { %v498_v7 = vpop.xlane.xlu0 %497 }
  0xfb   :  { %v677_v23 = vsel %vm676_vm10, %v675_v22, %v498_v7 }
  0xfe   :  { %v874_v16 = vpop.xlane.xlu1 %873 }
  0xff   :  { %v1051_v1 = vsel %vm676_vm10, %v1050_v25, %v874_v16  ;;  %v750_v16 = vlaneseq }
 0x101   :  { %v1803_v22 = vand.u32 127, %v750_v16 }
 0x102   :  { %v533_v18 = vpop.xlane.xlu0 %532 }
 0x103   :  { %v679_v27 = vsel %vm678_vm11, %v677_v23, %v533_v18  ;;  %vm1156_vm9 = vcmp.eq.s32.totalorder %v1803_v22, 1  ;;  %vm1158_vm10 = vcmp.eq.s32.totalorder %v1803_v22, 2 }
 0x106   :  { %v909_v19 = vpop.xlane.xlu1 %908 }
 0x107   :  { %v1052_v31 = vsel %vm678_vm11, %v1051_v1, %v909_v19  ;;  %vm1161_vm11 = vcmp.eq.s32.totalorder %v1803_v22, 3 }
 0x10a   :  { %v568_v20 = vpop.xlane.xlu0 %567 }
 0x10b   :  { %v681_v28 = vsel %vm680_vm12, %v679_v27, %v568_v20 }
 0x10e   :  { %v944_v24 = vpop.xlane.xlu1 %943 }
 0x10f   :  { %v1053_v35 = vsel %vm680_vm12, %v1052_v31, %v944_v24  ;;  %vm1164_vm12 = vcmp.eq.s32.totalorder %v1803_v22, 4 }
 0x112   :  { %v603_v26 = vpop.xlane.xlu0 %602 }
 0x113   :  { %v683_v33 = vsel %vm682_vm13, %v681_v28, %v603_v26 }
 0x116   :  { %v979_v29 = vpop.xlane.xlu1 %978 }
 0x117   :  { %v1054_v42 = vsel %vm682_vm13, %v1053_v35, %v979_v29 }
 0x11a   :  { %v638_v32 = vpop.xlane.xlu0 %637 }
 0x11b   :  { %v685_v37 = vsel %vm684_vm14, %v683_v33, %v638_v32 }
 0x11e   :  { %v1014_v38 = vpop.xlane.xlu1 %1013 }
 0x11f   :  { %v1055_v45 = vsel %vm684_vm14, %v1054_v42, %v1014_v38  ;;  %v1414_v42 = vmov 0  }
 0x120   :  { %1258 = vset.pattern.permute.xlu1 %v1414_v42 }
 0x122   :  { %v673_v43 = vpop.xlane.xlu0 %672 }
 0x123   :  { %v687_v44 = vsel %vm686_vm15, %v685_v37, %v673_v43  ;;  %v1191_v43 = vld [vmem:[%s1890_s10] ss:$0 sm:$0xff] }
 0x124   :  { %v688_v46 = vmul.f32 0.17677669, %v687_v44 }
 0x126   :  { %v1049_v49 = vpop.xlane.xlu1 %1048  ;;  %v690_v50 = vsel %vm689_vm0, -1e+30, %v688_v46 }
 0x127   :  { %v1056_v52 = vsel %vm686_vm15, %v1055_v45, %v1049_v49  ;;  %v691_v53 = vsel %vm374_vm2, %v690_v50, -inf }
 0x128   :  { %v1057_v60 = vmul.f32 0.17677669, %v1056_v52  ;;  %692 = vmax.xlane.f32.xlu0 %v691_v53 }
 0x129   :  { %v167_v51 = vpop.f32.mrb[0].mxu0  ;;  %v222_v55 = vpop.f32.mrb[0].mxu1 }
 0x12a   :  { %v1217_v59 = vpop.f32.mrb[1].mxu0  ;;  %v223_v61 = vadd.f32 %v222_v55, %v167_v51  ;;  %v1225_v62 = vpop.f32.mrb[1].mxu1  ;;  %v1059_v9 = vsel %vm1058_vm3, -1e+30, %v1057_v60 }
 0x12b   :  { %v170_v63 = vpop.f32.mrb[2].mxu0  ;;  %v225_v0 = vpop.f32.mrb[2].mxu1  ;;  %v1060_v11 = vsel %vm374_vm2, %v1059_v9, -inf  ;;  %v1416_v62 = vmov 2  }
 0x12c   :  { %v1218_v5 = vpop.f32.mrb[3].mxu0  ;;  %v235_v6 = vadd.f32 %v1190_v58, %v223_v61  ;;  %v1226_v10 = vpop.f32.mrb[3].mxu1  ;;  %1061 = vmax.xlane.f32.xlu1 %v1060_v11  ;;  %v1415_v61 = vmov 4   ;;  %v1417_v63 = vmov 5   ;;  %v1418_v0 = vmov 3  }
 0x12d   :  { %v1419_v5 = vmov 6  }
 0x12e   :  { %v236_v12 = vmax.f32 %v235_v6, 0.0 }
 0x130   :  { %v242_v14 = vpack.c.bf16 %v236_v12, %v236_v12 }
 0x132   :  { %1232 = vmatmul.mubr.msk.bf16.vlgmr.msra.gmra.mrb[4].mxu0 %vm129_vm1, %v242_v14  ;;  %v1195_v14 = vld [vmem:[%s1892_s12] ss:$0 sm:$0xff]  ;;  %s1421_s12 = smov [#allocation11]  }
 0x1b5   :  { %v693_v7 = vpop.xlane.xlu0 %692 }
 0x1b6   :  { %v694_v18 = vsub.f32 %v690_v50, %v693_v7  ;;  %vm752_vm5 = vcmp.eq.f32.partialorder %v690_v50, %v693_v7 }
 0x1b7   :  { %v753_v27 = vsel %vm752_vm5, %v1803_v22, 1073741824 }
 0x1b8   :  { %v695_v19 = vmul.f32 1.442695, %v694_v18  ;;  %v1813_v31 = vsel %vm374_vm2, %v753_v27, 2147483647 }
 0x1b9   :  { %v1062_v20 = vpop.xlane.xlu1 %1061  ;;  %v756_v35 = vshra.s32 %v1813_v31, 16  ;;  %v755_v10 = vand.u32 65535, %v1813_v31 }
 0x1ba   :  { %1277 = vpow2.f32 %v695_v19  ;;  %v1063_v23 = vsub.f32 %v1059_v9, %v1062_v20  ;;  %vm1119_vm4 = vcmp.eq.f32.partialorder %v1059_v9, %v1062_v20  ;;  %v1420_v9 = vmov 7   ;;  %v1198_v19 = vld [vmem:[%s1893_s13] ss:$0 sm:$0xff]  ;;  %s1173_s13 = sshll.u32 %s1421_s12, 4  ;;  %s1174_s13 = int_to_ptr.vmem [resolvable:$true] %s1173_s13 }
 0x1bb   :  { %v1120_v25 = vsel %vm1119_vm4, %v1803_v22, 1073741824  ;;  %v758_v38 = vcvt.s32.f32 %v756_v35  ;;  %v757_v11 = vcvt.s32.f32 %v755_v10  ;;  %s1375_s2 = scalar_lea.vmem %s1174_s13, 128  ;;  %p1380_p5 = scmp.lt.s32.totalorder %s1174_s13, %s1174_s13 }
 0x1bc   :  { %v1064_v24 = vmul.f32 1.442695, %v1063_v23  ;;  %v1807_v26 = vsel %vm374_vm2, %v1120_v25, 2147483647  ;;  %p1376_p4 = scmp.ne.s32.totalorder %s1174_s13, %s1375_s2  ;;  %p1381_p6 = scmp.lt.s32.totalorder %s1375_s2, %s1375_s2 }
 0x1bd   :  { %v1123_v28 = vshra.s32 %v1807_v26, 16 }
 0x1be   :  { %1279 = vpow2.f32 %v1064_v24  ;;  %p1382_p7 = por %p1381_p6, %p1380_p5 }
 0x1bf   :  { %v1815_v33 = vcvt.s32.f32 %v1123_v28 }
 0x1c0   :  { %p1383_p8 = pnand %p1382_p7, %p1376_p4 }
 0x1c4   :  { %v1278_v1 = vpop.eup %1277 }
 0x1c5   :  { %v697_v29 = vsel %vm374_vm2, %v1278_v1, 0.0 }
 0x1c6   :  { %698 = vadd.xlane.f32.xlu0 %v697_v29 }
 0x1c8   :  { %v1280_v32 = vpop.eup %1279 }
 0x1c9   :  { %v1066_v37 = vsel %vm374_vm2, %v1280_v32, 0.0 }
 0x1ca   :  { %1067 = vadd.xlane.f32.xlu1 %v1066_v37  ;;  %1126 = vmin.xlane.f32.xlu0 %v1815_v33 }
 0x1ce   :  { %759 = vmin.xlane.f32.xlu1 %v758_v38 }
 0x205   :  { %v298_v44 = vpop.f32.mrb[4].mxu0 }
 0x206   :  { %v299_v45 = vadd.f32 %v1191_v43, %v298_v44  ;;  %v1233_v46 = vpop.f32.mrb[5].mxu0 }
 0x207   :  { %v301_v48 = vpop.f32.mrb[6].mxu0 }
 0x208   :  { %v304_v49 = vmax.f32 %v299_v45, 0.0  ;;  %v1234_v50 = vpop.f32.mrb[7].mxu0 }
 0x20a   :  { %v308_v51 = vpack.c.bf16 %v304_v49, %v304_v49 }
 0x20c   :  { %1238 = vmatmul.mubr.msk.bf16.vlgmr.msra.gmra.mrb[4].mxu1 %vm321_vm6, %v308_v51 }
 0x253   :  { %v699_v52 = vpop.xlane.xlu0 %698 }
 0x254   :  { %1281 = vrcp.f32 %v699_v52 }
 0x257   :  { %v1068_v53 = vpop.xlane.xlu1 %1067  ;;  %v1837_v27 = vpop.xlane.xlu0 %1126 }
 0x258   :  { %1283 = vrcp.f32 %v1068_v53  ;;  %vm1128_vm8 = vcmp.eq.f32.partialorder %v1815_v33, %v1837_v27 }
 0x25b   :  { %v1825_v6 = vpop.xlane.xlu1 %759 }
 0x25c   :  { %vm761_vm7 = vcmp.eq.f32.partialorder %v758_v38, %v1825_v6 }
 0x25d   :  { %v762_v12 = vsel %vm761_vm7, %v757_v11, inf }
 0x25e   :  { %v1282_v55 = vpop.eup %1281 }
 0x25f   :  { %v701_v58 = vmul.f32 %v1282_v55, %v1278_v1  ;;  %v1122_v1 = vand.u32 65535, %v1807_v26 }
 0x261   :  { %709 = vperm.xlu0 %1259, %v701_v58   ;;  %704 = vperm.xlu1 %1258, %v701_v58   ;;  %v1124_v28 = vcvt.s32.f32 %v1122_v1 }
 0x262   :  { %v1284_v59 = vpop.eup %1283 }
 0x263   :  { %v1070_v60 = vmul.f32 %v1284_v59, %v1280_v32  ;;  %v1129_v29 = vsel %vm1128_vm8, %v1124_v28, inf  ;;  %v766_v28 = vcvt.f32.s32 %v1825_v6 }
 0x265   :  { %1263 = vset.pattern.permute.xlu0 %v1415_v61  ;;  %1073 = vperm.xlu1 %1258, %v1070_v60  }
 0x266   :  { %727 = vperm.xlu0 %1263, %v701_v58  }
 0x269   :  { %1260 = vset.pattern.permute.xlu1 %v1413_v39 }
 0x26a   :  { %1096 = vperm.xlu0 %1263, %v1070_v60   ;;  %1078 = vperm.xlu1 %1260, %v1070_v60  }
 0x26e   :  { %1261 = vset.pattern.permute.xlu1 %v1416_v62  ;;  %1265 = vset.pattern.permute.xlu0 %v1417_v63 }
 0x26f   :  { %715 = vperm.xlu1 %1261, %v701_v58  }
 0x273   :  { %1084 = vperm.xlu1 %1261, %v1070_v60  }
 0x277   :  { %1262 = vset.pattern.permute.xlu1 %v1418_v0 }
 0x278   :  { %721 = vperm.xlu1 %1262, %v701_v58  }
 0x27c   :  { %1090 = vperm.xlu1 %1262, %v1070_v60  }
 0x280   :  { %1264 = vset.pattern.permute.xlu1 %v1417_v63 }
 0x281   :  { %733 = vperm.xlu1 %1264, %v701_v58  }
 0x285   :  { %1266 = vset.pattern.permute.xlu1 %v1419_v5 }
 0x286   :  { %739 = vperm.xlu1 %1266, %v701_v58  }
 0x28a   :  { %1108 = vperm.xlu1 %1266, %v1070_v60  }
 0x28e   :  { %1267 = vset.pattern.permute.xlu1 %v1420_v9 }
 0x28f   :  { %745 = vperm.xlu1 %1267, %v701_v58  }
 0x293   :  { %1114 = vperm.xlu1 %1267, %v1070_v60  }
 0x297   :  { %1268 = vset.pattern.permute.xlu1 %v1414_v42 }
 0x2b7   :  { %763 = vmin.xlane.f32.xlu1 %v762_v12 }
 0x2df   :  { %v359_v15 = vpop.f32.mrb[4].mxu1 }
 0x2e0   :  { %v360_v7 = vadd.f32 %v1195_v14, %v359_v15  ;;  %v1239_v16 = vpop.f32.mrb[5].mxu1  ;;  %v705_v31 = vpop.permute.xlu1 %704 }
 0x2e1   :  { %v362_v18 = vpop.f32.mrb[6].mxu1  ;;  %v710_v45 = vpop.permute.xlu0 %709  ;;  %v707_v26 = vmul.f32 %v705_v31, %v1598_v54  ;;  %v1133_v31 = vcvt.f32.s32 %v1837_v27 }
 0x2e2   :  { %v365_v20 = vmax.f32 %v360_v7, 0.0  ;;  %v1240_v23 = vpop.f32.mrb[7].mxu1  ;;  %v712_v48 = vmul.f32 %v710_v45, %v1622_v41 }
 0x2e3   :  { %v1286_v23 = vld [vmem:[#allocation6] sm:$0xff] }
 0x2e4   :  { %v373_v24 = vmul.f32 %v1198_v19, %v365_v20  ;;  %v1074_v32 = vpop.permute.xlu1 %1073  ;;  %v713_v55 = vadd.f32 %v712_v48, %v707_v26  ;;  %v1285_v19 = vld [vmem:[#allocation3] sm:$0xff] }
 0x2e5   :  { %v728_v46 = vpop.permute.xlu0 %727  ;;  %v1076_v50 = vmul.f32 %v1074_v32, %v1610_v17  ;;  %v1140_v20 = vmul.f32 %v1285_v19, %v1285_v19 }
 0x2e6   :  { %v375_v25 = vsel %vm374_vm2, %v373_v24, 0.0  ;;  %v730_v0 = vmul.f32 %v728_v46, %v1694_v13  ;;  %v1144_v24 = vmul.f32 %v1286_v23, %v1286_v23 }
 0x2e7   :  { %376 = vadd.xlane.f32.xlu0 %v375_v25 }
 0x2e9   :  { %v1079_v35 = vpop.permute.xlu1 %1078  ;;  %v1097_v53 = vpop.permute.xlu0 %1096 }
 0x2ea   :  { %v1081_v33 = vmul.f32 %v1079_v35, %v1634_v3  ;;  %v1099_v17 = vmul.f32 %v1097_v53, %v1706_v40 }
 0x2ec   :  { %v1082_v58 = vadd.f32 %v1081_v33, %v1076_v50 }
 0x2ee   :  { %v716_v37 = vpop.permute.xlu1 %715 }
 0x2ef   :  { %v718_v51 = vmul.f32 %v716_v37, %v1646_v30 }
 0x2f1   :  { %v719_v61 = vadd.f32 %v718_v51, %v713_v55 }
 0x2f2   :  { %v1085_v38 = vpop.permute.xlu1 %1084 }
 0x2f3   :  { %v1087_v52 = vmul.f32 %v1085_v38, %v1658_v56  ;;  %v767_v38 = vshll.u32 %v766_v28, 16 }
 0x2f5   :  { %v1088_v41 = vadd.f32 %v1087_v52, %v1082_v58 }
 0x2f7   :  { %v722_v39 = vpop.permute.xlu1 %721 }
 0x2f8   :  { %v724_v59 = vmul.f32 %v722_v39, %v1670_v21  ;;  %v1134_v39 = vshll.u32 %v1133_v31, 16 }
 0x2fa   :  { %v725_v63 = vadd.f32 %v724_v59, %v719_v61 }
 0x2fb   :  { %v1091_v43 = vpop.permute.xlu1 %1090 }
 0x2fc   :  { %v731_v5 = vadd.f32 %v730_v0, %v725_v63 }
 0x2fd   :  { %1102 = vperm.xlu0 %1265, %v1070_v60   ;;  %v1093_v60 = vmul.f32 %v1091_v43, %v1682_v47 }
 0x2ff   :  { %v1094_v3 = vadd.f32 %v1093_v60, %v1088_v41 }
 0x300   :  { %v734_v44 = vpop.permute.xlu1 %733 }
 0x301   :  { %1269 = vset.pattern.permute.xlu0 %v1414_v42  ;;  %v736_v30 = vmul.f32 %v734_v44, %v1718_v8  ;;  %v1100_v10 = vadd.f32 %v1099_v17, %v1094_v3 }
 0x303   :  { %v737_v11 = vadd.f32 %v736_v30, %v731_v5 }
 0x305   :  { %v740_v42 = vpop.permute.xlu1 %739 }
 0x306   :  { %v742_v9 = vmul.f32 %v740_v42, %v1742_v2 }
 0x308   :  { %v743_v7 = vadd.f32 %v742_v9, %v737_v11 }
 0x309   :  { %v1109_v49 = vpop.permute.xlu1 %1108 }
 0x30a   :  { %v1111_v12 = vmul.f32 %v1109_v49, %v1754_v34  ;;  %v1145_v34 = vsel %vm129_vm1, %v1144_v24, 0.0 }
 0x30e   :  { %v746_v62 = vpop.permute.xlu1 %745 }
 0x30f   :  { %v748_v14 = vmul.f32 %v746_v62, %v1766_v57  ;;  %v1199_v57 = vld [vmem:[#allocation2] ss:$0 sm:$0xff] }
 0x311   :  { %v749_v16 = vadd.f32 %v748_v14, %v743_v7 }
 0x312   :  { %v1115_v47 = vpop.permute.xlu1 %1114 }
 0x313   :  { %v1117_v13 = vmul.f32 %v1115_v47, %v1776_v4 }
 0x31c   :  { %1130 = vmin.xlane.f32.xlu0 %v1129_v29 }
 0x344   :  { %v764_v4 = vpop.xlane.xlu1 %763 }
 0x345   :  { %v765_v35 = vcvt.f32.s32 %v764_v4 }
 0x347   :  { %v768_v44 = vadd.s32 %v767_v38, %v765_v35 }
 0x349   :  { %v1159_v46 = vcvt.s32.f32 %v768_v44 }
 0x374   :  { %v377_v54 = vpop.xlane.xlu0 %376 }
 0x375   :  { %v385_v25 = vadd.f32 %v1199_v57, %v377_v54 }
 0x37c   :  { %v1103_v56 = vpop.permute.xlu0 %1102 }
 0x37d   :  { %v1105_v21 = vmul.f32 %v1103_v56, %v1730_v36  ;;  %v1141_v36 = vsel %vm129_vm1, %v1140_v20, 0.0 }
 0x37f   :  { %v1106_v15 = vadd.f32 %v1105_v21, %v1100_v10 }
 0x381   :  { %v1112_v40 = vadd.f32 %v1111_v12, %v1106_v15 }
 0x383   :  { %v1118_v8 = vadd.f32 %v1117_v13, %v1112_v40 }
 0x385   :  { %v1136_v18 = vmul.f32 %v1118_v8, %v749_v16 }
 0x387   :  { %v1137_v2 = vsel %vm129_vm1, %v1136_v18, 0.0  ;;  %vm1149_vm1 = vcmp.eq.s32.totalorder %v1803_v22, 0 }
 0x388   :  { %1138 = vadd.xlane.f32.xlu1 %v1137_v2 }
 0x38c   :  { %1142 = vadd.xlane.f32.xlu1 %v1141_v36 }
 0x390   :  { %1146 = vadd.xlane.f32.xlu1 %v1145_v34 }
 0x3a1   :  { %1152 = vperm.xlu1 %1268, %v385_v25  }
 0x3a9   :  { %v1131_v29 = vpop.xlane.xlu0 %1130 }
 0x3aa   :  { %v1132_v37 = vcvt.f32.s32 %v1131_v29 }
 0x3ac   :  { %v1135_v45 = vadd.s32 %v1134_v39, %v1132_v37 }
 0x3ae   :  { %v1162_v27 = vcvt.s32.f32 %v1135_v45 }
 0x415   :  { %v1139_v1 = vpop.xlane.xlu1 %1138 }
 0x419   :  { %v1143_v32 = vpop.xlane.xlu1 %1142 }
 0x41d   :  { %v1147_v43 = vpop.xlane.xlu1 %1146 }
 0x41e   :  { %v1148_v26 = vadd.f32 %v1147_v43, %v1143_v32 }
 0x421   :  { %v1153_v42 = vpop.permute.xlu1 %1152 }
 0x422   :  { %v1155_v6 = vsel %vm1149_vm1, %v1153_v42, 0.0 }
 0x423   :  { %v1157_v48 = vsel %vm1156_vm9, %v1139_v1, %v1155_v6 }
 0x424   :  { %v1160_v33 = vsel %vm1158_vm10, %v1159_v46, %v1157_v48 }
 0x425   :  { %v1163_v49 = vsel %vm1161_vm11, %v1162_v27, %v1160_v33 }
 0x426   :  { %v1165_v50 = vsel %vm1164_vm12, %v1148_v26, %v1163_v49 }
 0x427   :  { %1166 = vst [vmem:[#allocation11] sm:$0xff] %v1165_v50 }
 0x428   :  { %1386 = shalt.err (!%p1383_p8)
}
 0x429   :  { %s1387_s3 = scalar_lea.hbm %s1895_s15, 128 }
 0x42a   :  { %p1388_p9 = scmp.ne.s32.totalorder %s1895_s15, %s1387_s3  ;;  %p1391_p10 = scmp.lt.u32.totalorder %s1387_s3, %s1895_s15 }
 0x42c   :  { %p1393_p11 = pnand %p1391_p10, %p1388_p9 }
 0x42e   :  { %1396 = shalt.err (!%p1393_p11)
}
 0x42f   :  { %1176 = dma.vmem_to_hbm [thread:$0]  %s1174_s13, 128, %s1895_s15, [#allocation5]  }
 0x430   :  { %1403 = dma.done.wait [#allocation5], 128  }
 0x431   :  { %1404 = vsyncadd [#allocation5], 4294967168 }
 0x432   :  { %1180 = vsyncpa [#allocation4], 1 }
 0x433   :  { %1181 = vsyncpa [#allocation7], 1 }
 0x434   :  { %1182 = vsyncpa [#allocation10], 1 }
 0x435   :  { %1183 = vsyncpa [#allocation5], 1 }

</bundles_post_ra>
